<compile_context>
chip_gen: v6e
topology: v6e:2x2x1
jax: 0.10.0
libtpu: 0.0.40
codegen_flags: <defaults>
</compile_context>

<pallas_src>
import numpy as np
import jax
import jax.numpy as jnp
from jax import lax
from jax.experimental import pallas as pl
from jax.experimental.pallas import tpu as pltpu

_VMEM_LIMIT = 64 * 1024 * 1024


# --------------------------------------------------------------------------
# Kernel 1: sequence-level input projection   gates_x[d] = x @ W_ih[d] + b[d]
# --------------------------------------------------------------------------
def lstm_gates_x_kernel(x_ref, wih_ref, b_ref, o_ref):
    x = x_ref[...].astype(wih_ref.dtype)          # bf16 into the MXU
    o_ref[...] = (jnp.dot(x, wih_ref[...], preferred_element_type=jnp.float32)
                  + b_ref[...])                   # bias folded in once per seq


# --------------------------------------------------------------------------
# Kernel 2: recurrence.  grid=(2,) over directions; time loop inside kernel.
# --------------------------------------------------------------------------
def lstm_recurrence_kernel(gx_ref, whh_ref, out_ref, h_sc, c_sc):
    d = pl.program_id(0)                          # 0 = forward, 1 = backward
    T = gx_ref.shape[0]
    H = h_sc.shape[1]

    h_sc[...] = jnp.zeros_like(h_sc)
    c_sc[...] = jnp.zeros_like(c_sc)
    whh = whh_ref[...]                            # (H, 4H) bf16, VMEM-resident

    def step(i, carry):
        t = jnp.where(d == 0, i, T - 1 - i)       # per-direction time index
        gx = gx_ref[t]                            # (B, 4H) precomputed x-path
        h = h_sc[...]
        c = c_sc[...]
        gates = gx + jnp.dot(h.astype(whh.dtype), whh,
                             preferred_element_type=jnp.float32)
        # PyTorch gate order [i, f, g, o]; elementwise math stays in f32.
        # (Gate slices are 128-aligned at production H=896; small test H pays
        #  a minor relayout only.)
        i_g = jax.nn.sigmoid(gates[:, 0 * H:1 * H])
        f_g = jax.nn.sigmoid(gates[:, 1 * H:2 * H])
        g_g = jnp.tanh(gates[:, 2 * H:3 * H])
        o_g = jax.nn.sigmoid(gates[:, 3 * H:4 * H])
        c_new = f_g * c + i_g * g_g
        h_new = o_g * jnp.tanh(c_new)
        h_sc[...] = h_new
        c_sc[...] = c_new
        out_ref[t] = h_new
        return carry

    lax.fori_loop(0, T, step, 0)


def lstm_bidir(x, wih, whh, b):
    """One bidirectional LSTM layer (PyTorch semantics, zero initial state).
    x: (B,T,Din) f32; wih: (2,Din,4H) bf16; whh: (2,H,4H) bf16; b: (2,1,4H) f32
    (= b_ih + b_hh).  Returns (B,T,2H) f32, forward half first per timestep."""
    B, T, Din = x.shape
    H4 = wih.shape[-1]
    H = H4 // 4

    # (B,T,Din) -> time-major flat (T*B, Din): one big matmul per direction.
    x_flat = jnp.transpose(x, (1, 0, 2)).reshape(T * B, Din)

    gates_x = pl.pallas_call(
        lstm_gates_x_kernel,
        out_shape=jax.ShapeDtypeStruct((2, T * B, H4), jnp.float32),
        grid_spec=pltpu.PrefetchScalarGridSpec(
            num_scalar_prefetch=0,
            grid=(2,),
            in_specs=[
                pl.BlockSpec((T * B, Din), lambda d: (0, 0)),
                pl.BlockSpec((None, Din, H4), lambda d: (d, 0, 0)),
                pl.BlockSpec((None, 1, H4), lambda d: (d, 0, 0)),
            ],
            out_specs=pl.BlockSpec((None, T * B, H4), lambda d: (d, 0, 0)),
        ),
        compiler_params=pltpu.CompilerParams(
            dimension_semantics=("parallel",),
            vmem_limit_bytes=_VMEM_LIMIT),
    )(x_flat, wih, b)

    gates_x = gates_x.reshape(2, T, B, H4)        # per-direction (T, B, 4H)

    out = pl.pallas_call(
        lstm_recurrence_kernel,
        out_shape=jax.ShapeDtypeStruct((2, T, B, H), jnp.float32),
        grid_spec=pltpu.PrefetchScalarGridSpec(
            num_scalar_prefetch=0,
            grid=(2,),
            in_specs=[
                pl.BlockSpec((None, T, B, H4), lambda d: (d, 0, 0, 0)),
                pl.BlockSpec((None, H, H4), lambda d: (d, 0, 0)),
            ],
            out_specs=pl.BlockSpec((None, T, B, H), lambda d: (d, 0, 0, 0)),
            scratch_shapes=[pltpu.VMEM((B, H), jnp.float32),
                            pltpu.VMEM((B, H), jnp.float32)],
        ),
        compiler_params=pltpu.CompilerParams(
            dimension_semantics=("parallel",),   # fwd/bwd independent (2 TCs on v7x)
            vmem_limit_bytes=_VMEM_LIMIT),
    )(gates_x, whh)

    # (2, T, B, H) -> (B, T, 2H), forward half first (matches PyTorch).
    return jnp.transpose(out, (2, 1, 0, 3)).reshape(B, T, 2 * H)


# --------------------------------------------------------------------------
# BatchNorm1d (training-mode batch stats, biased var, eps=1e-5) + LeakyReLU.
# --------------------------------------------------------------------------
def bn_lrelu_kernel(x_ref, g_ref, b_ref, o_ref):
    x = x_ref[...]                                           # (B, T, C)
    mean = jnp.mean(x, axis=(0, 1), keepdims=True)
    var = jnp.mean(jnp.square(x - mean), axis=(0, 1), keepdims=True)
    y = (x - mean) * lax.rsqrt(var + 1e-5) * g_ref[...] + b_ref[...]
    o_ref[...] = jnp.where(y >= 0, y, 0.01 * y)              # LeakyReLU(0.01)


def bn_lrelu(x, gamma, beta):
    # TODO(synk): at production (B,T,C) sizes, tile the channel axis (multiples
    # of 128) to stay under the scoped-VMEM limit; a single block is fine here.
    return pl.pallas_call(
        bn_lrelu_kernel,
        out_shape=jax.ShapeDtypeStruct(x.shape, jnp.float32),
    )(x, gamma, beta)


# --------------------------------------------------------------------------
# Plain linear (decoder_input) and fused fc_mu / fc_var / reparameterization.
# --------------------------------------------------------------------------
def linear_kernel(x_ref, w_ref, b_ref, o_ref):
    o_ref[...] = jnp.dot(x_ref[...], w_ref[...],
                         preferred_element_type=jnp.float32) + b_ref[...]


def linear(x, w, b):
    return pl.pallas_call(
        linear_kernel,
        out_shape=jax.ShapeDtypeStruct((x.shape[0], w.shape[1]), jnp.float32),
    )(x, w, b)


def heads_kernel(x_ref, wmu_ref, bmu_ref, wvar_ref, bvar_ref, eps_ref,
                 mu_ref, lv_ref, z_ref):
    x = x_ref[...]                                 # read flat encoding once
    mu = jnp.dot(x, wmu_ref[...], preferred_element_type=jnp.float32) + bmu_ref[...]
    lv = jnp.dot(x, wvar_ref[...], preferred_element_type=jnp.float32) + bvar_ref[...]
    mu_ref[...] = mu
    lv_ref[...] = lv
    z_ref[...] = eps_ref[...] * jnp.exp(0.5 * lv) + mu


def encode_heads(flat, w_mu, b_mu, w_var, b_var, eps):
    B = flat.shape[0]
    L = w_mu.shape[1]
    sds = jax.ShapeDtypeStruct((B, L), jnp.float32)
    return pl.pallas_call(
        heads_kernel,
        out_shape=(sds, sds, sds),
    )(flat, w_mu, b_mu, w_var, b_var, eps)


# --------------------------------------------------------------------------
# Parameter construction (deterministic, PyTorch-style uniform(-1/sqrt(H), .)).
# --------------------------------------------------------------------------
def _uniform(key, shape, k):
    return jax.random.uniform(key, shape, jnp.float32, -k, k)


def init_lstm_dir(key, in_dim, H):
    k = 1.0 / np.sqrt(H)
    k1, k2, k3 = jax.random.split(key, 3)
    wih = _uniform(k1, (2, in_dim, 4 * H), k).astype(jnp.bfloat16)  # W_ih^T
    whh = _uniform(k2, (2, H, 4 * H), k).astype(jnp.bfloat16)       # W_hh^T
    b = _uniform(k3, (2, 1, 4 * H), k)                              # b_ih + b_hh
    return (wih, whh, b)


def init_params(key, embedding_dim, context_length, latent_dim, hidden_dims):
    keys = iter(jax.random.split(key, 128))
    params = {'encoder': [], 'decoder': []}

    # encoder: per hidden dim one 2-layer bidirectional LSTM + BN + LeakyReLU
    in_dim = embedding_dim
    for h_dim in hidden_dims:
        H = h_dim // 2
        params['encoder'].append({
            'lstm_l0': init_lstm_dir(next(keys), in_dim, H),
            'lstm_l1': init_lstm_dir(next(keys), 2 * H, H),
            'bn_g': jnp.ones((1, 1, h_dim), jnp.float32),
            'bn_b': jnp.zeros((1, 1, h_dim), jnp.float32),
        })
        in_dim = h_dim

    flat_dim = hidden_dims[-1] * context_length
    kmu = 1.0 / np.sqrt(flat_dim)
    params['fc_mu_w'] = _uniform(next(keys), (flat_dim, latent_dim), kmu)
    params['fc_mu_b'] = _uniform(next(keys), (1, latent_dim), kmu)
    params['fc_var_w'] = _uniform(next(keys), (flat_dim, latent_dim), kmu)
    params['fc_var_b'] = _uniform(next(keys), (1, latent_dim), kmu)

    kz = 1.0 / np.sqrt(latent_dim)
    params['dec_in_w'] = _uniform(next(keys), (latent_dim, flat_dim), kz)
    params['dec_in_b'] = _uniform(next(keys), (1, flat_dim), kz)

    # decoder: hidden_dims reversed (torch module reverses in place)
    rev = list(reversed(hidden_dims))
    in_dim = rev[0]
    for i in range(len(rev)):
        H = (rev[i + 1] // 2) if (i + 1 < len(rev)) else (embedding_dim // 2)
        params['decoder'].append({
            'lstm': init_lstm_dir(next(keys), in_dim, H),
            'bn_g': jnp.ones((1, 1, 2 * H), jnp.float32),
            'bn_b': jnp.zeros((1, 1, 2 * H), jnp.float32),
        })
        in_dim = 2 * H
    return params


# --------------------------------------------------------------------------
# Forward pass:  returns [recons, input, mu, log_var]  (like the torch module)
# --------------------------------------------------------------------------
def beta_vae_forward(params, x, eps, context_length, rev_hidden0):
    B = x.shape[0]

    # ---- encode ----
    h = x
    for lp in params['encoder']:
        h = lstm_bidir(h, *lp['lstm_l0'])       # nn.LSTM num_layers=2: layer 0
        h = lstm_bidir(h, *lp['lstm_l1'])       #                        layer 1
        h = bn_lrelu(h, lp['bn_g'], lp['bn_b'])
    flat = h.reshape(B, -1)                     # torch.flatten(start_dim=1)

    # ---- fc_mu + fc_var + reparameterize fused (eps passed in; torch randn) ----
    mu, log_var, z = encode_heads(flat, params['fc_mu_w'], params['fc_mu_b'],
                                  params['fc_var_w'], params['fc_var_b'], eps)

    # ---- decode ----
    d = linear(z, params['dec_in_w'], params['dec_in_b'])
    d = d.reshape(B, context_length, rev_hidden0)
    for lp in params['decoder']:
        d = lstm_bidir(d, *lp['lstm'])
        d = bn_lrelu(d, lp['bn_g'], lp['bn_b'])
    return d, x, mu, log_var


# TODO(synk): loss_function / num_iter bookkeeping is training-time glue and is
# not part of forward(); it is not implemented here.

if __name__ == "__main__":
    # Small shapes consistent with the module (x: [B, context_length, embedding_dim])
    embedding_dim = 16
    context_length = 8
    latent_dim = 8
    hidden_dims = [32, 16]     # small stand-in for the default [1792, ..., 56]
    B = 2

    key = jax.random.PRNGKey(0)
    kp, kx, ke = jax.random.split(key, 3)
    params = init_params(kp, embedding_dim, context_length, latent_dim, hidden_dims)
    x = jax.random.normal(kx, (B, context_length, embedding_dim), jnp.float32)
    eps = jax.random.normal(ke, (B, latent_dim), jnp.float32)
    rev_hidden0 = list(reversed(hidden_dims))[0]

    fwd = jax.jit(lambda xx, ee: beta_vae_forward(
        params, xx, ee, context_length, rev_hidden0))

    recons, inp, mu, log_var = fwd(x, eps)
    jax.block_until_ready(recons)

    assert recons.shape == (B, context_length, embedding_dim)
    assert mu.shape == (B, latent_dim)
    assert log_var.shape == (B, latent_dim)
    assert bool(jnp.all(jnp.isfinite(recons)))
    print("KERNEL_OK")
</pallas_src>

<mosaic_0001>
module attributes {stable_mosaic.version = 11 : i64} {
  func.func @lstm_gates_x_kernel(%arg0: i32, %arg1: memref<16x16xf32, #tpu.memory_space<vmem>>, %arg2: memref<1x16x64xbf16, #tpu.memory_space<vmem>>, %arg3: memref<1x1x64xf32, #tpu.memory_space<vmem>>, %arg4: memref<1x16x64xf32, #tpu.memory_space<vmem>>) attributes {dimension_semantics = [#tpu.dimension_semantics<parallel>], iteration_bounds = array<i64: 2>, scalar_prefetch = 0 : i64, scratch_operands = 0 : i64, tpu.core_type = #tpu.core_type<tc>, window_params = [{pipeline_mode = #tpu.pipeline_mode<synchronous>, transform_indices = @transform_0, window_bounds = array<i64: 16, 16>}, {transform_indices = @transform_1, window_bounds = array<i64: 1, 16, 64>}, {transform_indices = @transform_2, window_bounds = array<i64: 1, 1, 64>}, {transform_indices = @transform_3, window_bounds = array<i64: 1, 16, 64>}]} {
    %c0 = arith.constant 0 : index
    %c0_0 = arith.constant 0 : index
    %0 = vector.load %arg1[%c0, %c0_0] : memref<16x16xf32, #tpu.memory_space<vmem>>, vector<16x16xf32>
    %1 = arith.truncf %0 : vector<16x16xf32> to vector<16x16xbf16>
    %c0_1 = arith.constant 0 : index
    %c0_2 = arith.constant 0 : index
    %c0_3 = arith.constant 0 : index
    %2 = vector.load %arg2[%c0_1, %c0_2, %c0_3] : memref<1x16x64xbf16, #tpu.memory_space<vmem>>, vector<1x16x64xbf16>
    %3 = vector.shape_cast %2 : vector<1x16x64xbf16> to vector<16x64xbf16>
    %cst = arith.constant dense<0.000000e+00> : vector<16x64xf32>
    %4 = tpu.matmul %1, %3, %cst {dimension_numbers = #tpu.dot_dimension_numbers<[1], [0], [0], [1], [0, 0, 1, 1], [], []>} : vector<16x16xbf16>, vector<16x64xbf16>, vector<16x64xf32> -> vector<16x64xf32>
    %c0_4 = arith.constant 0 : index
    %c0_5 = arith.constant 0 : index
    %c0_6 = arith.constant 0 : index
    %5 = vector.load %arg3[%c0_4, %c0_5, %c0_6] : memref<1x1x64xf32, #tpu.memory_space<vmem>>, vector<1x1x64xf32>
    %6 = vector.shape_cast %5 : vector<1x1x64xf32> to vector<1x64xf32>
    %7 = vector.broadcast %6 : vector<1x64xf32> to vector<16x64xf32>
    %8 = arith.addf %4, %7 : vector<16x64xf32>
    %c0_7 = arith.constant 0 : index
    %c0_8 = arith.constant 0 : index
    %c0_9 = arith.constant 0 : index
    %9 = vector.load %arg4[%c0_7, %c0_8, %c0_9] : memref<1x16x64xf32, #tpu.memory_space<vmem>>, vector<1x16x64xf32>
    %10 = vector.shape_cast %9 : vector<1x16x64xf32> to vector<16x64xf32>
    %11 = vector.shape_cast %8 : vector<16x64xf32> to vector<1x16x64xf32>
    tpu.vector_store %arg4[%c0_7, %c0_8, %c0_9], %11 {strides = array<i32>} : memref<1x16x64xf32, #tpu.memory_space<vmem>>, vector<1x16x64xf32>,
    return
  }
  func.func @transform_0(%arg0: i32) -> (i32, i32) {
    %c0_i32 = arith.constant 0 : i32
    %c0_i32_0 = arith.constant 0 : i32
    %c0_i32_1 = arith.constant 0 : i32
    return %c0_i32, %c0_i32_0 : i32, i32
  }
  func.func @transform_1(%arg0: i32) -> (i32, i32, i32) {
    %c0_i32 = arith.constant 0 : i32
    %c0_i32_0 = arith.constant 0 : i32
    %c0_i32_1 = arith.constant 0 : i32
    return %arg0, %c0_i32, %c0_i32_0 : i32, i32, i32
  }
  func.func @transform_2(%arg0: i32) -> (i32, i32, i32) {
    %c0_i32 = arith.constant 0 : i32
    %c0_i32_0 = arith.constant 0 : i32
    %c0_i32_1 = arith.constant 0 : i32
    return %arg0, %c0_i32, %c0_i32_0 : i32, i32, i32
  }
  func.func @transform_3(%arg0: i32) -> (i32, i32, i32) {
    %c0_i32 = arith.constant 0 : i32
    %c0_i32_0 = arith.constant 0 : i32
    %c0_i32_1 = arith.constant 0 : i32
    return %arg0, %c0_i32, %c0_i32_0 : i32, i32, i32
  }
}

module attributes {stable_mosaic.version = 11 : i64} {
  func.func @lstm_recurrence_kernel(%arg0: i32, %arg1: memref<1x8x2x64xf32, #tpu.memory_space<vmem>>, %arg2: memref<1x16x64xbf16, #tpu.memory_space<vmem>>, %arg3: memref<1x8x2x16xf32, #tpu.memory_space<vmem>>, %arg4: memref<2x16xf32, #tpu.memory_space<vmem>>, %arg5: memref<2x16xf32, #tpu.memory_space<vmem>>) attributes {dimension_semantics = [#tpu.dimension_semantics<parallel>], iteration_bounds = array<i64: 2>, scalar_prefetch = 0 : i64, scratch_operands = 2 : i64, tpu.core_type = #tpu.core_type<tc>, window_params = [{transform_indices = @transform_0, window_bounds = array<i64: 1, 8, 2, 64>}, {transform_indices = @transform_1, window_bounds = array<i64: 1, 16, 64>}, {transform_indices = @transform_2, window_bounds = array<i64: 1, 8, 2, 16>}]} {
    %cst = arith.constant 0.000000e+00 : f32
    %0 = vector.broadcast %cst : f32 to vector<2x16xf32>
    %c0 = arith.constant 0 : index
    %c0_0 = arith.constant 0 : index
    %1 = vector.load %arg4[%c0, %c0_0] : memref<2x16xf32, #tpu.memory_space<vmem>>, vector<2x16xf32>
    tpu.vector_store %arg4[%c0, %c0_0], %0 {strides = array<i32>} : memref<2x16xf32, #tpu.memory_space<vmem>>, vector<2x16xf32>,
    %cst_1 = arith.constant 0.000000e+00 : f32
    %2 = vector.broadcast %cst_1 : f32 to vector<2x16xf32>
    %c0_2 = arith.constant 0 : index
    %c0_3 = arith.constant 0 : index
    %3 = vector.load %arg5[%c0_2, %c0_3] : memref<2x16xf32, #tpu.memory_space<vmem>>, vector<2x16xf32>
    tpu.vector_store %arg5[%c0_2, %c0_3], %2 {strides = array<i32>} : memref<2x16xf32, #tpu.memory_space<vmem>>, vector<2x16xf32>,
    %c0_4 = arith.constant 0 : index
    %c0_5 = arith.constant 0 : index
    %c0_6 = arith.constant 0 : index
    %4 = vector.load %arg2[%c0_4, %c0_5, %c0_6] : memref<1x16x64xbf16, #tpu.memory_space<vmem>>, vector<1x16x64xbf16>
    %5 = vector.shape_cast %4 : vector<1x16x64xbf16> to vector<16x64xbf16>
    %c0_i32 = arith.constant 0 : i32
    %c8_i32 = arith.constant 8 : i32
    %6 = arith.addi %c0_i32, %c8_i32 : i32
    %c1_i32 = arith.constant 1 : i32
    scf.for %arg6 = %c0_i32 to %6 step %c1_i32  : i32 {
      %c0_i32_8 = arith.constant 0 : i32
      %7 = arith.cmpi eq, %arg0, %c0_i32_8 : i32
      %c7_i32 = arith.constant 7 : i32
      %8 = arith.subi %c7_i32, %arg6 : i32
      %9 = arith.select %7, %arg6, %8 : i32
      %c0_9 = arith.constant 0 : index
      %10 = arith.index_cast %9 : i32 to index
      %c0_10 = arith.constant 0 : index
      %c0_11 = arith.constant 0 : index
      %11 = vector.load %arg1[%c0_9, %10, %c0_10, %c0_11] : memref<1x8x2x64xf32, #tpu.memory_space<vmem>>, vector<1x1x2x64xf32>
      %12 = vector.shape_cast %11 : vector<1x1x2x64xf32> to vector<2x64xf32>
      %c0_12 = arith.constant 0 : index
      %c0_13 = arith.constant 0 : index
      %13 = vector.load %arg4[%c0_12, %c0_13] : memref<2x16xf32, #tpu.memory_space<vmem>>, vector<2x16xf32>
      %c0_14 = arith.constant 0 : index
      %c0_15 = arith.constant 0 : index
      %14 = vector.load %arg5[%c0_14, %c0_15] : memref<2x16xf32, #tpu.memory_space<vmem>>, vector<2x16xf32>
      %15 = arith.truncf %13 : vector<2x16xf32> to vector<2x16xbf16>
      %cst_16 = arith.constant dense<0.000000e+00> : vector<2x64xf32>
      %16 = tpu.matmul %15, %5, %cst_16 {dimension_numbers = #tpu.dot_dimension_numbers<[1], [0], [0], [1], [0, 0, 1, 1], [], []>} : vector<2x16xbf16>, vector<16x64xbf16>, vector<2x64xf32> -> vector<2x64xf32>
      %17 = arith.addf %12, %16 : vector<2x64xf32>
      %18 = vector.extract_strided_slice %17 {offsets = [0, 0], sizes = [2, 16], strides = [1, 1]} : vector<2x64xf32> to vector<2x16xf32>
      %19 = arith.negf %18 : vector<2x16xf32>
      %20 = math.exp %19 : vector<2x16xf32>
      %cst_17 = arith.constant 1.000000e+00 : f32
      %21 = vector.broadcast %cst_17 : f32 to vector<2x16xf32>
      %22 = arith.addf %21, %20 : vector<2x16xf32>
      %23 = arith.divf %21, %22 : vector<2x16xf32>
      %24 = vector.extract_strided_slice %17 {offsets = [0, 16], sizes = [2, 16], strides = [1, 1]} : vector<2x64xf32> to vector<2x16xf32>
      %25 = arith.negf %24 : vector<2x16xf32>
      %26 = math.exp %25 : vector<2x16xf32>
      %cst_18 = arith.constant 1.000000e+00 : f32
      %27 = vector.broadcast %cst_18 : f32 to vector<2x16xf32>
      %28 = arith.addf %27, %26 : vector<2x16xf32>
      %29 = arith.divf %27, %28 : vector<2x16xf32>
      %30 = vector.extract_strided_slice %17 {offsets = [0, 32], sizes = [2, 16], strides = [1, 1]} : vector<2x64xf32> to vector<2x16xf32>
      %31 = math.tanh %30 : vector<2x16xf32>
      %32 = vector.extract_strided_slice %17 {offsets = [0, 48], sizes = [2, 16], strides = [1, 1]} : vector<2x64xf32> to vector<2x16xf32>
      %33 = arith.negf %32 : vector<2x16xf32>
      %34 = math.exp %33 : vector<2x16xf32>
      %cst_19 = arith.constant 1.000000e+00 : f32
      %35 = vector.broadcast %cst_19 : f32 to vector<2x16xf32>
      %36 = arith.addf %35, %34 : vector<2x16xf32>
      %37 = arith.divf %35, %36 : vector<2x16xf32>
      %38 = arith.mulf %29, %14 : vector<2x16xf32>
      %39 = arith.mulf %23, %31 : vector<2x16xf32>
      %40 = arith.addf %38, %39 : vector<2x16xf32>
      %41 = math.tanh %40 : vector<2x16xf32>
      %42 = arith.mulf %37, %41 : vector<2x16xf32>
      %c0_20 = arith.constant 0 : index
      %c0_21 = arith.constant 0 : index
      %43 = vector.load %arg4[%c0_20, %c0_21] : memref<2x16xf32, #tpu.memory_space<vmem>>, vector<2x16xf32>
      tpu.vector_store %arg4[%c0_20, %c0_21], %42 {strides = array<i32>} : memref<2x16xf32, #tpu.memory_space<vmem>>, vector<2x16xf32>,
      %c0_22 = arith.constant 0 : index
      %c0_23 = arith.constant 0 : index
      %44 = vector.load %arg5[%c0_22, %c0_23] : memref<2x16xf32, #tpu.memory_space<vmem>>, vector<2x16xf32>
      tpu.vector_store %arg5[%c0_22, %c0_23], %40 {strides = array<i32>} : memref<2x16xf32, #tpu.memory_space<vmem>>, vector<2x16xf32>,
      %c0_24 = arith.constant 0 : index
      %45 = arith.index_cast %9 : i32 to index
      %c0_25 = arith.constant 0 : index
      %c0_26 = arith.constant 0 : index
      %46 = vector.load %arg3[%c0_24, %45, %c0_25, %c0_26] : memref<1x8x2x16xf32, #tpu.memory_space<vmem>>, vector<1x1x2x16xf32>
      %47 = vector.shape_cast %46 : vector<1x1x2x16xf32> to vector<2x16xf32>
      %48 = vector.shape_cast %42 : vector<2x16xf32> to vector<1x1x2x16xf32>
      tpu.vector_store %arg3[%c0_24, %45, %c0_25, %c0_26], %48 {strides = array<i32>} : memref<1x8x2x16xf32, #tpu.memory_space<vmem>>, vector<1x1x2x16xf32>,
    }
    %c8_i32_7 = arith.constant 8 : i32
    return
  }
  func.func @transform_0(%arg0: i32) -> (i32, i32, i32, i32) {
    %c0_i32 = arith.constant 0 : i32
    %c0_i32_0 = arith.constant 0 : i32
    %c0_i32_1 = arith.constant 0 : i32
    %c0_i32_2 = arith.constant 0 : i32
    return %arg0, %c0_i32, %c0_i32_0, %c0_i32_1 : i32, i32, i32, i32
  }
  func.func @transform_1(%arg0: i32) -> (i32, i32, i32) {
    %c0_i32 = arith.constant 0 : i32
    %c0_i32_0 = arith.constant 0 : i32
    %c0_i32_1 = arith.constant 0 : i32
    return %arg0, %c0_i32, %c0_i32_0 : i32, i32, i32
  }
  func.func @transform_2(%arg0: i32) -> (i32, i32, i32, i32) {
    %c0_i32 = arith.constant 0 : i32
    %c0_i32_0 = arith.constant 0 : i32
    %c0_i32_1 = arith.constant 0 : i32
    %c0_i32_2 = arith.constant 0 : i32
    return %arg0, %c0_i32, %c0_i32_0, %c0_i32_1 : i32, i32, i32, i32
  }
}

module attributes {stable_mosaic.version = 11 : i64} {
  func.func @bn_lrelu_kernel(%arg0: memref<2x8x32xf32, #tpu.memory_space<vmem>>, %arg1: memref<1x1x32xf32, #tpu.memory_space<vmem>>, %arg2: memref<1x1x32xf32, #tpu.memory_space<vmem>>, %arg3: memref<2x8x32xf32, #tpu.memory_space<vmem>>) attributes {dimension_semantics = [], scalar_prefetch = 0 : i64, scratch_operands = 0 : i64, tpu.core_type = #tpu.core_type<tc>} {
    %c0 = arith.constant 0 : index
    %c0_0 = arith.constant 0 : index
    %c0_1 = arith.constant 0 : index
    %0 = vector.load %arg0[%c0, %c0_0, %c0_1] : memref<2x8x32xf32, #tpu.memory_space<vmem>>, vector<2x8x32xf32>
    %cst = arith.constant dense<0.000000e+00> : vector<32xf32>
    %1 = vector.multi_reduction <add>, %0, %cst [0, 1] : vector<2x8x32xf32> to vector<32xf32>
    %2 = vector.shape_cast %1 : vector<32xf32> to vector<1x1x32xf32>
    %cst_2 = arith.constant 1.600000e+01 : f32
    %3 = vector.broadcast %cst_2 : f32 to vector<1x1x32xf32>
    %4 = arith.divf %2, %3 : vector<1x1x32xf32>
    %5 = vector.broadcast %4 : vector<1x1x32xf32> to vector<2x8x32xf32>
    %6 = arith.subf %0, %5 : vector<2x8x32xf32>
    %7 = arith.mulf %6, %6 : vector<2x8x32xf32>
    %cst_3 = arith.constant dense<0.000000e+00> : vector<32xf32>
    %8 = vector.multi_reduction <add>, %7, %cst_3 [0, 1] : vector<2x8x32xf32> to vector<32xf32>
    %9 = vector.shape_cast %8 : vector<32xf32> to vector<1x1x32xf32>
    %cst_4 = arith.constant 1.600000e+01 : f32
    %10 = vector.broadcast %cst_4 : f32 to vector<1x1x32xf32>
    %11 = arith.divf %9, %10 : vector<1x1x32xf32>
    %12 = vector.broadcast %4 : vector<1x1x32xf32> to vector<2x8x32xf32>
    %13 = arith.subf %0, %12 : vector<2x8x32xf32>
    %cst_5 = arith.constant 9.99999974E-6 : f32
    %14 = vector.broadcast %cst_5 : f32 to vector<1x1x32xf32>
    %15 = arith.addf %11, %14 : vector<1x1x32xf32>
    %16 = math.rsqrt %15 : vector<1x1x32xf32>
    %17 = vector.broadcast %16 : vector<1x1x32xf32> to vector<2x8x32xf32>
    %18 = arith.mulf %13, %17 : vector<2x8x32xf32>
    %c0_6 = arith.constant 0 : index
    %c0_7 = arith.constant 0 : index
    %c0_8 = arith.constant 0 : index
    %19 = vector.load %arg1[%c0_6, %c0_7, %c0_8] : memref<1x1x32xf32, #tpu.memory_space<vmem>>, vector<1x1x32xf32>
    %20 = vector.broadcast %19 : vector<1x1x32xf32> to vector<2x8x32xf32>
    %21 = arith.mulf %18, %20 : vector<2x8x32xf32>
    %c0_9 = arith.constant 0 : index
    %c0_10 = arith.constant 0 : index
    %c0_11 = arith.constant 0 : index
    %22 = vector.load %arg2[%c0_9, %c0_10, %c0_11] : memref<1x1x32xf32, #tpu.memory_space<vmem>>, vector<1x1x32xf32>
    %23 = vector.broadcast %22 : vector<1x1x32xf32> to vector<2x8x32xf32>
    %24 = arith.addf %21, %23 : vector<2x8x32xf32>
    %cst_12 = arith.constant 0.000000e+00 : f32
    %25 = vector.broadcast %cst_12 : f32 to vector<2x8x32xf32>
    %26 = arith.cmpf oge, %24, %25 : vector<2x8x32xf32>
    %cst_13 = arith.constant 0.00999999977 : f32
    %27 = vector.broadcast %cst_13 : f32 to vector<2x8x32xf32>
    %28 = arith.mulf %27, %24 : vector<2x8x32xf32>
    %29 = arith.select %26, %24, %28 : vector<2x8x32xi1>, vector<2x8x32xf32>
    %c0_14 = arith.constant 0 : index
    %c0_15 = arith.constant 0 : index
    %c0_16 = arith.constant 0 : index
    %30 = vector.load %arg3[%c0_14, %c0_15, %c0_16] : memref<2x8x32xf32, #tpu.memory_space<vmem>>, vector<2x8x32xf32>
    tpu.vector_store %arg3[%c0_14, %c0_15, %c0_16], %29 {strides = array<i32>} : memref<2x8x32xf32, #tpu.memory_space<vmem>>, vector<2x8x32xf32>,
    return
  }
}

module attributes {stable_mosaic.version = 11 : i64} {
  func.func @lstm_gates_x_kernel(%arg0: i32, %arg1: memref<16x32xf32, #tpu.memory_space<vmem>>, %arg2: memref<1x32x64xbf16, #tpu.memory_space<vmem>>, %arg3: memref<1x1x64xf32, #tpu.memory_space<vmem>>, %arg4: memref<1x16x64xf32, #tpu.memory_space<vmem>>) attributes {dimension_semantics = [#tpu.dimension_semantics<parallel>], iteration_bounds = array<i64: 2>, scalar_prefetch = 0 : i64, scratch_operands = 0 : i64, tpu.core_type = #tpu.core_type<tc>, window_params = [{pipeline_mode = #tpu.pipeline_mode<synchronous>, transform_indices = @transform_0, window_bounds = array<i64: 16, 32>}, {transform_indices = @transform_1, window_bounds = array<i64: 1, 32, 64>}, {transform_indices = @transform_2, window_bounds = array<i64: 1, 1, 64>}, {transform_indices = @transform_3, window_bounds = array<i64: 1, 16, 64>}]} {
    %c0 = arith.constant 0 : index
    %c0_0 = arith.constant 0 : index
    %0 = vector.load %arg1[%c0, %c0_0] : memref<16x32xf32, #tpu.memory_space<vmem>>, vector<16x32xf32>
    %1 = arith.truncf %0 : vector<16x32xf32> to vector<16x32xbf16>
    %c0_1 = arith.constant 0 : index
    %c0_2 = arith.constant 0 : index
    %c0_3 = arith.constant 0 : index
    %2 = vector.load %arg2[%c0_1, %c0_2, %c0_3] : memref<1x32x64xbf16, #tpu.memory_space<vmem>>, vector<1x32x64xbf16>
    %3 = vector.shape_cast %2 : vector<1x32x64xbf16> to vector<32x64xbf16>
    %cst = arith.constant dense<0.000000e+00> : vector<16x64xf32>
    %4 = tpu.matmul %1, %3, %cst {dimension_numbers = #tpu.dot_dimension_numbers<[1], [0], [0], [1], [0, 0, 1, 1], [], []>} : vector<16x32xbf16>, vector<32x64xbf16>, vector<16x64xf32> -> vector<16x64xf32>
    %c0_4 = arith.constant 0 : index
    %c0_5 = arith.constant 0 : index
    %c0_6 = arith.constant 0 : index
    %5 = vector.load %arg3[%c0_4, %c0_5, %c0_6] : memref<1x1x64xf32, #tpu.memory_space<vmem>>, vector<1x1x64xf32>
    %6 = vector.shape_cast %5 : vector<1x1x64xf32> to vector<1x64xf32>
    %7 = vector.broadcast %6 : vector<1x64xf32> to vector<16x64xf32>
    %8 = arith.addf %4, %7 : vector<16x64xf32>
    %c0_7 = arith.constant 0 : index
    %c0_8 = arith.constant 0 : index
    %c0_9 = arith.constant 0 : index
    %9 = vector.load %arg4[%c0_7, %c0_8, %c0_9] : memref<1x16x64xf32, #tpu.memory_space<vmem>>, vector<1x16x64xf32>
    %10 = vector.shape_cast %9 : vector<1x16x64xf32> to vector<16x64xf32>
    %11 = vector.shape_cast %8 : vector<16x64xf32> to vector<1x16x64xf32>
    tpu.vector_store %arg4[%c0_7, %c0_8, %c0_9], %11 {strides = array<i32>} : memref<1x16x64xf32, #tpu.memory_space<vmem>>, vector<1x16x64xf32>,
    return
  }
  func.func @transform_0(%arg0: i32) -> (i32, i32) {
    %c0_i32 = arith.constant 0 : i32
    %c0_i32_0 = arith.constant 0 : i32
    %c0_i32_1 = arith.constant 0 : i32
    return %c0_i32, %c0_i32_0 : i32, i32
  }
  func.func @transform_1(%arg0: i32) -> (i32, i32, i32) {
    %c0_i32 = arith.constant 0 : i32
    %c0_i32_0 = arith.constant 0 : i32
    %c0_i32_1 = arith.constant 0 : i32
    return %arg0, %c0_i32, %c0_i32_0 : i32, i32, i32
  }
  func.func @transform_2(%arg0: i32) -> (i32, i32, i32) {
    %c0_i32 = arith.constant 0 : i32
    %c0_i32_0 = arith.constant 0 : i32
    %c0_i32_1 = arith.constant 0 : i32
    return %arg0, %c0_i32, %c0_i32_0 : i32, i32, i32
  }
  func.func @transform_3(%arg0: i32) -> (i32, i32, i32) {
    %c0_i32 = arith.constant 0 : i32
    %c0_i32_0 = arith.constant 0 : i32
    %c0_i32_1 = arith.constant 0 : i32
    return %arg0, %c0_i32, %c0_i32_0 : i32, i32, i32
  }
}

module attributes {stable_mosaic.version = 11 : i64} {
  func.func @lstm_gates_x_kernel(%arg0: i32, %arg1: memref<16x32xf32, #tpu.memory_space<vmem>>, %arg2: memref<1x32x32xbf16, #tpu.memory_space<vmem>>, %arg3: memref<1x1x32xf32, #tpu.memory_space<vmem>>, %arg4: memref<1x16x32xf32, #tpu.memory_space<vmem>>) attributes {dimension_semantics = [#tpu.dimension_semantics<parallel>], iteration_bounds = array<i64: 2>, scalar_prefetch = 0 : i64, scratch_operands = 0 : i64, tpu.core_type = #tpu.core_type<tc>, window_params = [{pipeline_mode = #tpu.pipeline_mode<synchronous>, transform_indices = @transform_0, window_bounds = array<i64: 16, 32>}, {transform_indices = @transform_1, window_bounds = array<i64: 1, 32, 32>}, {transform_indices = @transform_2, window_bounds = array<i64: 1, 1, 32>}, {transform_indices = @transform_3, window_bounds = array<i64: 1, 16, 32>}]} {
    %c0 = arith.constant 0 : index
    %c0_0 = arith.constant 0 : index
    %0 = vector.load %arg1[%c0, %c0_0] : memref<16x32xf32, #tpu.memory_space<vmem>>, vector<16x32xf32>
    %1 = arith.truncf %0 : vector<16x32xf32> to vector<16x32xbf16>
    %c0_1 = arith.constant 0 : index
    %c0_2 = arith.constant 0 : index
    %c0_3 = arith.constant 0 : index
    %2 = vector.load %arg2[%c0_1, %c0_2, %c0_3] : memref<1x32x32xbf16, #tpu.memory_space<vmem>>, vector<1x32x32xbf16>
    %3 = vector.shape_cast %2 : vector<1x32x32xbf16> to vector<32x32xbf16>
    %cst = arith.constant dense<0.000000e+00> : vector<16x32xf32>
    %4 = tpu.matmul %1, %3, %cst {dimension_numbers = #tpu.dot_dimension_numbers<[1], [0], [0], [1], [0, 0, 1, 1], [], []>} : vector<16x32xbf16>, vector<32x32xbf16>, vector<16x32xf32> -> vector<16x32xf32>
    %c0_4 = arith.constant 0 : index
    %c0_5 = arith.constant 0 : index
    %c0_6 = arith.constant 0 : index
    %5 = vector.load %arg3[%c0_4, %c0_5, %c0_6] : memref<1x1x32xf32, #tpu.memory_space<vmem>>, vector<1x1x32xf32>
    %6 = vector.shape_cast %5 : vector<1x1x32xf32> to vector<1x32xf32>
    %7 = vector.broadcast %6 : vector<1x32xf32> to vector<16x32xf32>
    %8 = arith.addf %4, %7 : vector<16x32xf32>
    %c0_7 = arith.constant 0 : index
    %c0_8 = arith.constant 0 : index
    %c0_9 = arith.constant 0 : index
    %9 = vector.load %arg4[%c0_7, %c0_8, %c0_9] : memref<1x16x32xf32, #tpu.memory_space<vmem>>, vector<1x16x32xf32>
    %10 = vector.shape_cast %9 : vector<1x16x32xf32> to vector<16x32xf32>
    %11 = vector.shape_cast %8 : vector<16x32xf32> to vector<1x16x32xf32>
    tpu.vector_store %arg4[%c0_7, %c0_8, %c0_9], %11 {strides = array<i32>} : memref<1x16x32xf32, #tpu.memory_space<vmem>>, vector<1x16x32xf32>,
    return
  }
  func.func @transform_0(%arg0: i32) -> (i32, i32) {
    %c0_i32 = arith.constant 0 : i32
    %c0_i32_0 = arith.constant 0 : i32
    %c0_i32_1 = arith.constant 0 : i32
    return %c0_i32, %c0_i32_0 : i32, i32
  }
  func.func @transform_1(%arg0: i32) -> (i32, i32, i32) {
    %c0_i32 = arith.constant 0 : i32
    %c0_i32_0 = arith.constant 0 : i32
    %c0_i32_1 = arith.constant 0 : i32
    return %arg0, %c0_i32, %c0_i32_0 : i32, i32, i32
  }
  func.func @transform_2(%arg0: i32) -> (i32, i32, i32) {
    %c0_i32 = arith.constant 0 : i32
    %c0_i32_0 = arith.constant 0 : i32
    %c0_i32_1 = arith.constant 0 : i32
    return %arg0, %c0_i32, %c0_i32_0 : i32, i32, i32
  }
  func.func @transform_3(%arg0: i32) -> (i32, i32, i32) {
    %c0_i32 = arith.constant 0 : i32
    %c0_i32_0 = arith.constant 0 : i32
    %c0_i32_1 = arith.constant 0 : i32
    return %arg0, %c0_i32, %c0_i32_0 : i32, i32, i32
  }
}

module attributes {stable_mosaic.version = 11 : i64} {
  func.func @lstm_recurrence_kernel(%arg0: i32, %arg1: memref<1x8x2x32xf32, #tpu.memory_space<vmem>>, %arg2: memref<1x8x32xbf16, #tpu.memory_space<vmem>>, %arg3: memref<1x8x2x8xf32, #tpu.memory_space<vmem>>, %arg4: memref<2x8xf32, #tpu.memory_space<vmem>>, %arg5: memref<2x8xf32, #tpu.memory_space<vmem>>) attributes {dimension_semantics = [#tpu.dimension_semantics<parallel>], iteration_bounds = array<i64: 2>, scalar_prefetch = 0 : i64, scratch_operands = 2 : i64, tpu.core_type = #tpu.core_type<tc>, window_params = [{transform_indices = @transform_0, window_bounds = array<i64: 1, 8, 2, 32>}, {transform_indices = @transform_1, window_bounds = array<i64: 1, 8, 32>}, {transform_indices = @transform_2, window_bounds = array<i64: 1, 8, 2, 8>}]} {
    %cst = arith.constant 0.000000e+00 : f32
    %0 = vector.broadcast %cst : f32 to vector<2x8xf32>
    %c0 = arith.constant 0 : index
    %c0_0 = arith.constant 0 : index
    %1 = vector.load %arg4[%c0, %c0_0] : memref<2x8xf32, #tpu.memory_space<vmem>>, vector<2x8xf32>
    tpu.vector_store %arg4[%c0, %c0_0], %0 {strides = array<i32>} : memref<2x8xf32, #tpu.memory_space<vmem>>, vector<2x8xf32>,
    %cst_1 = arith.constant 0.000000e+00 : f32
    %2 = vector.broadcast %cst_1 : f32 to vector<2x8xf32>
    %c0_2 = arith.constant 0 : index
    %c0_3 = arith.constant 0 : index
    %3 = vector.load %arg5[%c0_2, %c0_3] : memref<2x8xf32, #tpu.memory_space<vmem>>, vector<2x8xf32>
    tpu.vector_store %arg5[%c0_2, %c0_3], %2 {strides = array<i32>} : memref<2x8xf32, #tpu.memory_space<vmem>>, vector<2x8xf32>,
    %c0_4 = arith.constant 0 : index
    %c0_5 = arith.constant 0 : index
    %c0_6 = arith.constant 0 : index
    %4 = vector.load %arg2[%c0_4, %c0_5, %c0_6] : memref<1x8x32xbf16, #tpu.memory_space<vmem>>, vector<1x8x32xbf16>
    %5 = vector.shape_cast %4 : vector<1x8x32xbf16> to vector<8x32xbf16>
    %c0_i32 = arith.constant 0 : i32
    %c8_i32 = arith.constant 8 : i32
    %6 = arith.addi %c0_i32, %c8_i32 : i32
    %c1_i32 = arith.constant 1 : i32
    scf.for %arg6 = %c0_i32 to %6 step %c1_i32  : i32 {
      %c0_i32_8 = arith.constant 0 : i32
      %7 = arith.cmpi eq, %arg0, %c0_i32_8 : i32
      %c7_i32 = arith.constant 7 : i32
      %8 = arith.subi %c7_i32, %arg6 : i32
      %9 = arith.select %7, %arg6, %8 : i32
      %c0_9 = arith.constant 0 : index
      %10 = arith.index_cast %9 : i32 to index
      %c0_10 = arith.constant 0 : index
      %c0_11 = arith.constant 0 : index
      %11 = vector.load %arg1[%c0_9, %10, %c0_10, %c0_11] : memref<1x8x2x32xf32, #tpu.memory_space<vmem>>, vector<1x1x2x32xf32>
      %12 = vector.shape_cast %11 : vector<1x1x2x32xf32> to vector<2x32xf32>
      %c0_12 = arith.constant 0 : index
      %c0_13 = arith.constant 0 : index
      %13 = vector.load %arg4[%c0_12, %c0_13] : memref<2x8xf32, #tpu.memory_space<vmem>>, vector<2x8xf32>
      %c0_14 = arith.constant 0 : index
      %c0_15 = arith.constant 0 : index
      %14 = vector.load %arg5[%c0_14, %c0_15] : memref<2x8xf32, #tpu.memory_space<vmem>>, vector<2x8xf32>
      %15 = arith.truncf %13 : vector<2x8xf32> to vector<2x8xbf16>
      %cst_16 = arith.constant dense<0.000000e+00> : vector<2x32xf32>
      %16 = tpu.matmul %15, %5, %cst_16 {dimension_numbers = #tpu.dot_dimension_numbers<[1], [0], [0], [1], [0, 0, 1, 1], [], []>} : vector<2x8xbf16>, vector<8x32xbf16>, vector<2x32xf32> -> vector<2x32xf32>
      %17 = arith.addf %12, %16 : vector<2x32xf32>
      %18 = vector.extract_strided_slice %17 {offsets = [0, 0], sizes = [2, 8], strides = [1, 1]} : vector<2x32xf32> to vector<2x8xf32>
      %19 = arith.negf %18 : vector<2x8xf32>
      %20 = math.exp %19 : vector<2x8xf32>
      %cst_17 = arith.constant 1.000000e+00 : f32
      %21 = vector.broadcast %cst_17 : f32 to vector<2x8xf32>
      %22 = arith.addf %21, %20 : vector<2x8xf32>
      %23 = arith.divf %21, %22 : vector<2x8xf32>
      %24 = vector.extract_strided_slice %17 {offsets = [0, 8], sizes = [2, 8], strides = [1, 1]} : vector<2x32xf32> to vector<2x8xf32>
      %25 = arith.negf %24 : vector<2x8xf32>
      %26 = math.exp %25 : vector<2x8xf32>
      %cst_18 = arith.constant 1.000000e+00 : f32
      %27 = vector.broadcast %cst_18 : f32 to vector<2x8xf32>
      %28 = arith.addf %27, %26 : vector<2x8xf32>
      %29 = arith.divf %27, %28 : vector<2x8xf32>
      %30 = vector.extract_strided_slice %17 {offsets = [0, 16], sizes = [2, 8], strides = [1, 1]} : vector<2x32xf32> to vector<2x8xf32>
      %31 = math.tanh %30 : vector<2x8xf32>
      %32 = vector.extract_strided_slice %17 {offsets = [0, 24], sizes = [2, 8], strides = [1, 1]} : vector<2x32xf32> to vector<2x8xf32>
      %33 = arith.negf %32 : vector<2x8xf32>
      %34 = math.exp %33 : vector<2x8xf32>
      %cst_19 = arith.constant 1.000000e+00 : f32
      %35 = vector.broadcast %cst_19 : f32 to vector<2x8xf32>
      %36 = arith.addf %35, %34 : vector<2x8xf32>
      %37 = arith.divf %35, %36 : vector<2x8xf32>
      %38 = arith.mulf %29, %14 : vector<2x8xf32>
      %39 = arith.mulf %23, %31 : vector<2x8xf32>
      %40 = arith.addf %38, %39 : vector<2x8xf32>
      %41 = math.tanh %40 : vector<2x8xf32>
      %42 = arith.mulf %37, %41 : vector<2x8xf32>
      %c0_20 = arith.constant 0 : index
      %c0_21 = arith.constant 0 : index
      %43 = vector.load %arg4[%c0_20, %c0_21] : memref<2x8xf32, #tpu.memory_space<vmem>>, vector<2x8xf32>
      tpu.vector_store %arg4[%c0_20, %c0_21], %42 {strides = array<i32>} : memref<2x8xf32, #tpu.memory_space<vmem>>, vector<2x8xf32>,
      %c0_22 = arith.constant 0 : index
      %c0_23 = arith.constant 0 : index
      %44 = vector.load %arg5[%c0_22, %c0_23] : memref<2x8xf32, #tpu.memory_space<vmem>>, vector<2x8xf32>
      tpu.vector_store %arg5[%c0_22, %c0_23], %40 {strides = array<i32>} : memref<2x8xf32, #tpu.memory_space<vmem>>, vector<2x8xf32>,
      %c0_24 = arith.constant 0 : index
      %45 = arith.index_cast %9 : i32 to index
      %c0_25 = arith.constant 0 : index
      %c0_26 = arith.constant 0 : index
      %46 = vector.load %arg3[%c0_24, %45, %c0_25, %c0_26] : memref<1x8x2x8xf32, #tpu.memory_space<vmem>>, vector<1x1x2x8xf32>
      %47 = vector.shape_cast %46 : vector<1x1x2x8xf32> to vector<2x8xf32>
      %48 = vector.shape_cast %42 : vector<2x8xf32> to vector<1x1x2x8xf32>
      tpu.vector_store %arg3[%c0_24, %45, %c0_25, %c0_26], %48 {strides = array<i32>} : memref<1x8x2x8xf32, #tpu.memory_space<vmem>>, vector<1x1x2x8xf32>,
    }
    %c8_i32_7 = arith.constant 8 : i32
    return
  }
  func.func @transform_0(%arg0: i32) -> (i32, i32, i32, i32) {
    %c0_i32 = arith.constant 0 : i32
    %c0_i32_0 = arith.constant 0 : i32
    %c0_i32_1 = arith.constant 0 : i32
    %c0_i32_2 = arith.constant 0 : i32
    return %arg0, %c0_i32, %c0_i32_0, %c0_i32_1 : i32, i32, i32, i32
  }
  func.func @transform_1(%arg0: i32) -> (i32, i32, i32) {
    %c0_i32 = arith.constant 0 : i32
    %c0_i32_0 = arith.constant 0 : i32
    %c0_i32_1 = arith.constant 0 : i32
    return %arg0, %c0_i32, %c0_i32_0 : i32, i32, i32
  }
  func.func @transform_2(%arg0: i32) -> (i32, i32, i32, i32) {
    %c0_i32 = arith.constant 0 : i32
    %c0_i32_0 = arith.constant 0 : i32
    %c0_i32_1 = arith.constant 0 : i32
    %c0_i32_2 = arith.constant 0 : i32
    return %arg0, %c0_i32, %c0_i32_0, %c0_i32_1 : i32, i32, i32, i32
  }
}

module attributes {stable_mosaic.version = 11 : i64} {
  func.func @lstm_gates_x_kernel(%arg0: i32, %arg1: memref<16x16xf32, #tpu.memory_space<vmem>>, %arg2: memref<1x16x32xbf16, #tpu.memory_space<vmem>>, %arg3: memref<1x1x32xf32, #tpu.memory_space<vmem>>, %arg4: memref<1x16x32xf32, #tpu.memory_space<vmem>>) attributes {dimension_semantics = [#tpu.dimension_semantics<parallel>], iteration_bounds = array<i64: 2>, scalar_prefetch = 0 : i64, scratch_operands = 0 : i64, tpu.core_type = #tpu.core_type<tc>, window_params = [{pipeline_mode = #tpu.pipeline_mode<synchronous>, transform_indices = @transform_0, window_bounds = array<i64: 16, 16>}, {transform_indices = @transform_1, window_bounds = array<i64: 1, 16, 32>}, {transform_indices = @transform_2, window_bounds = array<i64: 1, 1, 32>}, {transform_indices = @transform_3, window_bounds = array<i64: 1, 16, 32>}]} {
    %c0 = arith.constant 0 : index
    %c0_0 = arith.constant 0 : index
    %0 = vector.load %arg1[%c0, %c0_0] : memref<16x16xf32, #tpu.memory_space<vmem>>, vector<16x16xf32>
    %1 = arith.truncf %0 : vector<16x16xf32> to vector<16x16xbf16>
    %c0_1 = arith.constant 0 : index
    %c0_2 = arith.constant 0 : index
    %c0_3 = arith.constant 0 : index
    %2 = vector.load %arg2[%c0_1, %c0_2, %c0_3] : memref<1x16x32xbf16, #tpu.memory_space<vmem>>, vector<1x16x32xbf16>
    %3 = vector.shape_cast %2 : vector<1x16x32xbf16> to vector<16x32xbf16>
    %cst = arith.constant dense<0.000000e+00> : vector<16x32xf32>
    %4 = tpu.matmul %1, %3, %cst {dimension_numbers = #tpu.dot_dimension_numbers<[1], [0], [0], [1], [0, 0, 1, 1], [], []>} : vector<16x16xbf16>, vector<16x32xbf16>, vector<16x32xf32> -> vector<16x32xf32>
    %c0_4 = arith.constant 0 : index
    %c0_5 = arith.constant 0 : index
    %c0_6 = arith.constant 0 : index
    %5 = vector.load %arg3[%c0_4, %c0_5, %c0_6] : memref<1x1x32xf32, #tpu.memory_space<vmem>>, vector<1x1x32xf32>
    %6 = vector.shape_cast %5 : vector<1x1x32xf32> to vector<1x32xf32>
    %7 = vector.broadcast %6 : vector<1x32xf32> to vector<16x32xf32>
    %8 = arith.addf %4, %7 : vector<16x32xf32>
    %c0_7 = arith.constant 0 : index
    %c0_8 = arith.constant 0 : index
    %c0_9 = arith.constant 0 : index
    %9 = vector.load %arg4[%c0_7, %c0_8, %c0_9] : memref<1x16x32xf32, #tpu.memory_space<vmem>>, vector<1x16x32xf32>
    %10 = vector.shape_cast %9 : vector<1x16x32xf32> to vector<16x32xf32>
    %11 = vector.shape_cast %8 : vector<16x32xf32> to vector<1x16x32xf32>
    tpu.vector_store %arg4[%c0_7, %c0_8, %c0_9], %11 {strides = array<i32>} : memref<1x16x32xf32, #tpu.memory_space<vmem>>, vector<1x16x32xf32>,
    return
  }
  func.func @transform_0(%arg0: i32) -> (i32, i32) {
    %c0_i32 = arith.constant 0 : i32
    %c0_i32_0 = arith.constant 0 : i32
    %c0_i32_1 = arith.constant 0 : i32
    return %c0_i32, %c0_i32_0 : i32, i32
  }
  func.func @transform_1(%arg0: i32) -> (i32, i32, i32) {
    %c0_i32 = arith.constant 0 : i32
    %c0_i32_0 = arith.constant 0 : i32
    %c0_i32_1 = arith.constant 0 : i32
    return %arg0, %c0_i32, %c0_i32_0 : i32, i32, i32
  }
  func.func @transform_2(%arg0: i32) -> (i32, i32, i32) {
    %c0_i32 = arith.constant 0 : i32
    %c0_i32_0 = arith.constant 0 : i32
    %c0_i32_1 = arith.constant 0 : i32
    return %arg0, %c0_i32, %c0_i32_0 : i32, i32, i32
  }
  func.func @transform_3(%arg0: i32) -> (i32, i32, i32) {
    %c0_i32 = arith.constant 0 : i32
    %c0_i32_0 = arith.constant 0 : i32
    %c0_i32_1 = arith.constant 0 : i32
    return %arg0, %c0_i32, %c0_i32_0 : i32, i32, i32
  }
}

module attributes {stable_mosaic.version = 11 : i64} {
  func.func @bn_lrelu_kernel(%arg0: memref<2x8x16xf32, #tpu.memory_space<vmem>>, %arg1: memref<1x1x16xf32, #tpu.memory_space<vmem>>, %arg2: memref<1x1x16xf32, #tpu.memory_space<vmem>>, %arg3: memref<2x8x16xf32, #tpu.memory_space<vmem>>) attributes {dimension_semantics = [], scalar_prefetch = 0 : i64, scratch_operands = 0 : i64, tpu.core_type = #tpu.core_type<tc>} {
    %c0 = arith.constant 0 : index
    %c0_0 = arith.constant 0 : index
    %c0_1 = arith.constant 0 : index
    %0 = vector.load %arg0[%c0, %c0_0, %c0_1] : memref<2x8x16xf32, #tpu.memory_space<vmem>>, vector<2x8x16xf32>
    %cst = arith.constant dense<0.000000e+00> : vector<16xf32>
    %1 = vector.multi_reduction <add>, %0, %cst [0, 1] : vector<2x8x16xf32> to vector<16xf32>
    %2 = vector.shape_cast %1 : vector<16xf32> to vector<1x1x16xf32>
    %cst_2 = arith.constant 1.600000e+01 : f32
    %3 = vector.broadcast %cst_2 : f32 to vector<1x1x16xf32>
    %4 = arith.divf %2, %3 : vector<1x1x16xf32>
    %5 = vector.broadcast %4 : vector<1x1x16xf32> to vector<2x8x16xf32>
    %6 = arith.subf %0, %5 : vector<2x8x16xf32>
    %7 = arith.mulf %6, %6 : vector<2x8x16xf32>
    %cst_3 = arith.constant dense<0.000000e+00> : vector<16xf32>
    %8 = vector.multi_reduction <add>, %7, %cst_3 [0, 1] : vector<2x8x16xf32> to vector<16xf32>
    %9 = vector.shape_cast %8 : vector<16xf32> to vector<1x1x16xf32>
    %cst_4 = arith.constant 1.600000e+01 : f32
    %10 = vector.broadcast %cst_4 : f32 to vector<1x1x16xf32>
    %11 = arith.divf %9, %10 : vector<1x1x16xf32>
    %12 = vector.broadcast %4 : vector<1x1x16xf32> to vector<2x8x16xf32>
    %13 = arith.subf %0, %12 : vector<2x8x16xf32>
    %cst_5 = arith.constant 9.99999974E-6 : f32
    %14 = vector.broadcast %cst_5 : f32 to vector<1x1x16xf32>
    %15 = arith.addf %11, %14 : vector<1x1x16xf32>
    %16 = math.rsqrt %15 : vector<1x1x16xf32>
    %17 = vector.broadcast %16 : vector<1x1x16xf32> to vector<2x8x16xf32>
    %18 = arith.mulf %13, %17 : vector<2x8x16xf32>
    %c0_6 = arith.constant 0 : index
    %c0_7 = arith.constant 0 : index
    %c0_8 = arith.constant 0 : index
    %19 = vector.load %arg1[%c0_6, %c0_7, %c0_8] : memref<1x1x16xf32, #tpu.memory_space<vmem>>, vector<1x1x16xf32>
    %20 = vector.broadcast %19 : vector<1x1x16xf32> to vector<2x8x16xf32>
    %21 = arith.mulf %18, %20 : vector<2x8x16xf32>
    %c0_9 = arith.constant 0 : index
    %c0_10 = arith.constant 0 : index
    %c0_11 = arith.constant 0 : index
    %22 = vector.load %arg2[%c0_9, %c0_10, %c0_11] : memref<1x1x16xf32, #tpu.memory_space<vmem>>, vector<1x1x16xf32>
    %23 = vector.broadcast %22 : vector<1x1x16xf32> to vector<2x8x16xf32>
    %24 = arith.addf %21, %23 : vector<2x8x16xf32>
    %cst_12 = arith.constant 0.000000e+00 : f32
    %25 = vector.broadcast %cst_12 : f32 to vector<2x8x16xf32>
    %26 = arith.cmpf oge, %24, %25 : vector<2x8x16xf32>
    %cst_13 = arith.constant 0.00999999977 : f32
    %27 = vector.broadcast %cst_13 : f32 to vector<2x8x16xf32>
    %28 = arith.mulf %27, %24 : vector<2x8x16xf32>
    %29 = arith.select %26, %24, %28 : vector<2x8x16xi1>, vector<2x8x16xf32>
    %c0_14 = arith.constant 0 : index
    %c0_15 = arith.constant 0 : index
    %c0_16 = arith.constant 0 : index
    %30 = vector.load %arg3[%c0_14, %c0_15, %c0_16] : memref<2x8x16xf32, #tpu.memory_space<vmem>>, vector<2x8x16xf32>
    tpu.vector_store %arg3[%c0_14, %c0_15, %c0_16], %29 {strides = array<i32>} : memref<2x8x16xf32, #tpu.memory_space<vmem>>, vector<2x8x16xf32>,
    return
  }
}

module attributes {stable_mosaic.version = 11 : i64} {
  func.func @linear_kernel(%arg0: memref<2x8xf32, #tpu.memory_space<vmem>>, %arg1: memref<8x128xf32, #tpu.memory_space<vmem>>, %arg2: memref<1x128xf32, #tpu.memory_space<vmem>>, %arg3: memref<2x128xf32, #tpu.memory_space<vmem>>) attributes {dimension_semantics = [], scalar_prefetch = 0 : i64, scratch_operands = 0 : i64, tpu.core_type = #tpu.core_type<tc>} {
    %c0 = arith.constant 0 : index
    %c0_0 = arith.constant 0 : index
    %0 = vector.load %arg0[%c0, %c0_0] : memref<2x8xf32, #tpu.memory_space<vmem>>, vector<2x8xf32>
    %c0_1 = arith.constant 0 : index
    %c0_2 = arith.constant 0 : index
    %1 = vector.load %arg1[%c0_1, %c0_2] : memref<8x128xf32, #tpu.memory_space<vmem>>, vector<8x128xf32>
    %cst = arith.constant dense<0.000000e+00> : vector<2x128xf32>
    %2 = tpu.matmul %0, %1, %cst {dimension_numbers = #tpu.dot_dimension_numbers<[1], [0], [0], [1], [0, 0, 1, 1], [], []>} : vector<2x8xf32>, vector<8x128xf32>, vector<2x128xf32> -> vector<2x128xf32>
    %c0_3 = arith.constant 0 : index
    %c0_4 = arith.constant 0 : index
    %3 = vector.load %arg2[%c0_3, %c0_4] : memref<1x128xf32, #tpu.memory_space<vmem>>, vector<1x128xf32>
    %4 = vector.broadcast %3 : vector<1x128xf32> to vector<2x128xf32>
    %5 = arith.addf %2, %4 : vector<2x128xf32>
    %c0_5 = arith.constant 0 : index
    %c0_6 = arith.constant 0 : index
    %6 = vector.load %arg3[%c0_5, %c0_6] : memref<2x128xf32, #tpu.memory_space<vmem>>, vector<2x128xf32>
    tpu.vector_store %arg3[%c0_5, %c0_6], %5 {strides = array<i32>} : memref<2x128xf32, #tpu.memory_space<vmem>>, vector<2x128xf32>,
    return
  }
}

module attributes {stable_mosaic.version = 11 : i64} {
  func.func @bn_lrelu_kernel(%arg0: memref<2x8x16xf32, #tpu.memory_space<vmem>>, %arg1: memref<1x1x16xf32, #tpu.memory_space<vmem>>, %arg2: memref<1x1x16xf32, #tpu.memory_space<vmem>>, %arg3: memref<2x8x16xf32, #tpu.memory_space<vmem>>) attributes {dimension_semantics = [], scalar_prefetch = 0 : i64, scratch_operands = 0 : i64, tpu.core_type = #tpu.core_type<tc>} {
    %c0 = arith.constant 0 : index
    %c0_0 = arith.constant 0 : index
    %c0_1 = arith.constant 0 : index
    %0 = vector.load %arg0[%c0, %c0_0, %c0_1] : memref<2x8x16xf32, #tpu.memory_space<vmem>>, vector<2x8x16xf32>
    %cst = arith.constant dense<0.000000e+00> : vector<16xf32>
    %1 = vector.multi_reduction <add>, %0, %cst [0, 1] : vector<2x8x16xf32> to vector<16xf32>
    %2 = vector.shape_cast %1 : vector<16xf32> to vector<1x1x16xf32>
    %cst_2 = arith.constant 1.600000e+01 : f32
    %3 = vector.broadcast %cst_2 : f32 to vector<1x1x16xf32>
    %4 = arith.divf %2, %3 : vector<1x1x16xf32>
    %5 = vector.broadcast %4 : vector<1x1x16xf32> to vector<2x8x16xf32>
    %6 = arith.subf %0, %5 : vector<2x8x16xf32>
    %7 = arith.mulf %6, %6 : vector<2x8x16xf32>
    %cst_3 = arith.constant dense<0.000000e+00> : vector<16xf32>
    %8 = vector.multi_reduction <add>, %7, %cst_3 [0, 1] : vector<2x8x16xf32> to vector<16xf32>
    %9 = vector.shape_cast %8 : vector<16xf32> to vector<1x1x16xf32>
    %cst_4 = arith.constant 1.600000e+01 : f32
    %10 = vector.broadcast %cst_4 : f32 to vector<1x1x16xf32>
    %11 = arith.divf %9, %10 : vector<1x1x16xf32>
    %12 = vector.broadcast %4 : vector<1x1x16xf32> to vector<2x8x16xf32>
    %13 = arith.subf %0, %12 : vector<2x8x16xf32>
    %cst_5 = arith.constant 9.99999974E-6 : f32
    %14 = vector.broadcast %cst_5 : f32 to vector<1x1x16xf32>
    %15 = arith.addf %11, %14 : vector<1x1x16xf32>
    %16 = math.rsqrt %15 : vector<1x1x16xf32>
    %17 = vector.broadcast %16 : vector<1x1x16xf32> to vector<2x8x16xf32>
    %18 = arith.mulf %13, %17 : vector<2x8x16xf32>
    %c0_6 = arith.constant 0 : index
    %c0_7 = arith.constant 0 : index
    %c0_8 = arith.constant 0 : index
    %19 = vector.load %arg1[%c0_6, %c0_7, %c0_8] : memref<1x1x16xf32, #tpu.memory_space<vmem>>, vector<1x1x16xf32>
    %20 = vector.broadcast %19 : vector<1x1x16xf32> to vector<2x8x16xf32>
    %21 = arith.mulf %18, %20 : vector<2x8x16xf32>
    %c0_9 = arith.constant 0 : index
    %c0_10 = arith.constant 0 : index
    %c0_11 = arith.constant 0 : index
    %22 = vector.load %arg2[%c0_9, %c0_10, %c0_11] : memref<1x1x16xf32, #tpu.memory_space<vmem>>, vector<1x1x16xf32>
    %23 = vector.broadcast %22 : vector<1x1x16xf32> to vector<2x8x16xf32>
    %24 = arith.addf %21, %23 : vector<2x8x16xf32>
    %cst_12 = arith.constant 0.000000e+00 : f32
    %25 = vector.broadcast %cst_12 : f32 to vector<2x8x16xf32>
    %26 = arith.cmpf oge, %24, %25 : vector<2x8x16xf32>
    %cst_13 = arith.constant 0.00999999977 : f32
    %27 = vector.broadcast %cst_13 : f32 to vector<2x8x16xf32>
    %28 = arith.mulf %27, %24 : vector<2x8x16xf32>
    %29 = arith.select %26, %24, %28 : vector<2x8x16xi1>, vector<2x8x16xf32>
    %c0_14 = arith.constant 0 : index
    %c0_15 = arith.constant 0 : index
    %c0_16 = arith.constant 0 : index
    %30 = vector.load %arg3[%c0_14, %c0_15, %c0_16] : memref<2x8x16xf32, #tpu.memory_space<vmem>>, vector<2x8x16xf32>
    tpu.vector_store %arg3[%c0_14, %c0_15, %c0_16], %29 {strides = array<i32>} : memref<2x8x16xf32, #tpu.memory_space<vmem>>, vector<2x8x16xf32>,
    return
  }
}

module attributes {stable_mosaic.version = 11 : i64} {
  func.func @heads_kernel(%arg0: memref<2x128xf32, #tpu.memory_space<vmem>>, %arg1: memref<128x8xf32, #tpu.memory_space<vmem>>, %arg2: memref<1x8xf32, #tpu.memory_space<vmem>>, %arg3: memref<128x8xf32, #tpu.memory_space<vmem>>, %arg4: memref<1x8xf32, #tpu.memory_space<vmem>>, %arg5: memref<2x8xf32, #tpu.memory_space<vmem>>, %arg6: memref<2x8xf32, #tpu.memory_space<vmem>>, %arg7: memref<2x8xf32, #tpu.memory_space<vmem>>, %arg8: memref<2x8xf32, #tpu.memory_space<vmem>>) attributes {dimension_semantics = [], scalar_prefetch = 0 : i64, scratch_operands = 0 : i64, tpu.core_type = #tpu.core_type<tc>} {
    %c0 = arith.constant 0 : index
    %c0_0 = arith.constant 0 : index
    %0 = vector.load %arg0[%c0, %c0_0] : memref<2x128xf32, #tpu.memory_space<vmem>>, vector<2x128xf32>
    %c0_1 = arith.constant 0 : index
    %c0_2 = arith.constant 0 : index
    %1 = vector.load %arg1[%c0_1, %c0_2] : memref<128x8xf32, #tpu.memory_space<vmem>>, vector<128x8xf32>
    %cst = arith.constant dense<0.000000e+00> : vector<2x8xf32>
    %2 = tpu.matmul %0, %1, %cst {dimension_numbers = #tpu.dot_dimension_numbers<[1], [0], [0], [1], [0, 0, 1, 1], [], []>} : vector<2x128xf32>, vector<128x8xf32>, vector<2x8xf32> -> vector<2x8xf32>
    %c0_3 = arith.constant 0 : index
    %c0_4 = arith.constant 0 : index
    %3 = vector.load %arg2[%c0_3, %c0_4] : memref<1x8xf32, #tpu.memory_space<vmem>>, vector<1x8xf32>
    %4 = vector.broadcast %3 : vector<1x8xf32> to vector<2x8xf32>
    %5 = arith.addf %2, %4 : vector<2x8xf32>
    %c0_5 = arith.constant 0 : index
    %c0_6 = arith.constant 0 : index
    %6 = vector.load %arg3[%c0_5, %c0_6] : memref<128x8xf32, #tpu.memory_space<vmem>>, vector<128x8xf32>
    %cst_7 = arith.constant dense<0.000000e+00> : vector<2x8xf32>
    %7 = tpu.matmul %0, %6, %cst_7 {dimension_numbers = #tpu.dot_dimension_numbers<[1], [0], [0], [1], [0, 0, 1, 1], [], []>} : vector<2x128xf32>, vector<128x8xf32>, vector<2x8xf32> -> vector<2x8xf32>
    %c0_8 = arith.constant 0 : index
    %c0_9 = arith.constant 0 : index
    %8 = vector.load %arg4[%c0_8, %c0_9] : memref<1x8xf32, #tpu.memory_space<vmem>>, vector<1x8xf32>
    %9 = vector.broadcast %8 : vector<1x8xf32> to vector<2x8xf32>
    %10 = arith.addf %7, %9 : vector<2x8xf32>
    %c0_10 = arith.constant 0 : index
    %c0_11 = arith.constant 0 : index
    %11 = vector.load %arg6[%c0_10, %c0_11] : memref<2x8xf32, #tpu.memory_space<vmem>>, vector<2x8xf32>
    tpu.vector_store %arg6[%c0_10, %c0_11], %5 {strides = array<i32>} : memref<2x8xf32, #tpu.memory_space<vmem>>, vector<2x8xf32>,
    %c0_12 = arith.constant 0 : index
    %c0_13 = arith.constant 0 : index
    %12 = vector.load %arg7[%c0_12, %c0_13] : memref<2x8xf32, #tpu.memory_space<vmem>>, vector<2x8xf32>
    tpu.vector_store %arg7[%c0_12, %c0_13], %10 {strides = array<i32>} : memref<2x8xf32, #tpu.memory_space<vmem>>, vector<2x8xf32>,
    %c0_14 = arith.constant 0 : index
    %c0_15 = arith.constant 0 : index
    %13 = vector.load %arg5[%c0_14, %c0_15] : memref<2x8xf32, #tpu.memory_space<vmem>>, vector<2x8xf32>
    %cst_16 = arith.constant 5.000000e-01 : f32
    %14 = vector.broadcast %cst_16 : f32 to vector<2x8xf32>
    %15 = arith.mulf %14, %10 : vector<2x8xf32>
    %16 = math.exp %15 : vector<2x8xf32>
    %17 = arith.mulf %13, %16 : vector<2x8xf32>
    %18 = arith.addf %17, %5 : vector<2x8xf32>
    %c0_17 = arith.constant 0 : index
    %c0_18 = arith.constant 0 : index
    %19 = vector.load %arg8[%c0_17, %c0_18] : memref<2x8xf32, #tpu.memory_space<vmem>>, vector<2x8xf32>
    tpu.vector_store %arg8[%c0_17, %c0_18], %18 {strides = array<i32>} : memref<2x8xf32, #tpu.memory_space<vmem>>, vector<2x8xf32>,
    return
  }
}

</mosaic_0001>

<bundles_post_ra>
// kernel: _lambda_.19
= control target key start
LH: loop header
LB: loop body
LE: loop exit
PB: predicated region body
PF: predicated region fallthrough
CT: control target
= control target key end

     0   :  { %s451_s9 = smov 0   ;;  %s510_s0 = inlined_call_operand.vmem [shape: f32[2,8,2,64], index: 0, kind: input, shape index: {}]   ;;  %s511_s1 = inlined_call_operand.vmem [shape: bf16[2,16,64], index: 1, kind: input, shape index: {}]   ;;  %s512_s2 = inlined_call_operand.vmem [shape: f32[2,8,2,16], index: 2, kind: output, shape index: {}]  }
   0x1 LB: > { %s457_s10 = sadd.s32 4294967295, %s422_s9   ;;  %p356_p0 = scmp.ge.s32.totalorder %s422_s9, 1  ;;  %s422_s9 = sphi %s451_s9, %s12_s9  }
   0x2   : > { %p122_p1 = scmp.lt.s32.totalorder %s422_s9, 3 }
   0x4   : > { %p123_p2 = pnand %p356_p0, %p122_p1 }
   0x5   : > { %p149_p3 = scmp.lt.s32.totalorder (!%p123_p2), %s457_s10, 1  ;;  %s482_s23 = smov (!%p123_p2), 0  }
   0x6   : > { %126 = sbr.rel (%p123_p2) target bundleno = 712 (0x2c8), region = 28 }
   0xb   : > { %vm165_vm0 = vcmask 123904   ;;  %v428_v0 = vmov 0.0   ;;  %s150_s11 = scalar_select %p149_p3, %s457_s10, 1 }
   0xc   : > { %166 = vst.msk [vmem:[#allocation2] sm:$0x3] %vm165_vm0, %v428_v0  ;;  %167 = vst.msk [vmem:[#allocation3] sm:$0x3] %vm165_vm0, %v428_v0 }
   0xd   : > { %s369_s12 = sshll.u32 %s150_s11, 4  ;;  %s370_s13 = sshll.u32 %s150_s11, 3 }
   0xe   : > { %s468_s16 = scalar_lea.vmem %s510_s0, %s369_s12  ;;  %s158_s19 = scalar_lea.vmem %s511_s1, %s370_s13 }
   0xf   : > { %s476_s22 = scalar_lea.vmem %s512_s2, %s369_s12  ;;  %v478_v1 = vld [vmem:[%s158_s19] sm:$0xf]  ;;  %v480_v2 = vld [vmem:[%s158_s19 + $0x4] sm:$0xf] }
  0x10 LB: >> { %v364_v3 = vcombine.low %v478_v1, %v480_v2  ;;  %v429_v5 = vmov 0.0   ;;  %vm430_vm1 = vmmov 0   ;;  %vm191_vm2 = vcmask 130048   ;;  %p176_p4 = scmp.eq.s32.totalorder %s457_s10, 0  ;;  %s177_s24 = ssub.s32 7, %s426_s23  ;;  %s426_s23 = sphi %s482_s23, %s175_s23  }
  0x11   : >> { %374 = vmatprep.subr.bf16.mxu0 %v429_v5  ;;  %376 = vmatprep.mubr.msk.bf16.mxu0 %vm430_vm1, %v429_v5  ;;  %s431_s28 = smov 96   ;;  %s432_s29 = smov 16  }
  0x12   : >> { %375 = vmatpush3.bf16.msra.mxu0 %v364_v3  ;;  %s492_s25 = scalar_select %p176_p4, %s426_s23, %s177_s24 }
  0x13   : >> { %v182_v4 = vld [vmem:[#allocation2] sm:$0x3]  ;;  %v183_v14 = vld [vmem:[#allocation3] sm:$0x3]  ;;  %s433_s30 = smov 32   ;;  %s434_s3 = smov 112  }
  0x14   : >> { %v184_v6 = vpack.c.bf16 %v182_v4, %v182_v4  ;;  %s363_s26 = sshll.u32 %s492_s25, 1  ;;  %s435_s4 = smov 80  }
  0x15   : >> { %s180_s27 = scalar_lea.vmem %s468_s16, %s363_s26  ;;  %s274_s5 = scalar_lea.vmem %s476_s22, %s363_s26 }
  0x16   : >> { %377 = vmatmul.mubr.msk.bf16.vlgmr.msra.gmra.mxu0 %vm191_vm2, %v184_v6  ;;  %v181_v7 = vld [vmem:[%s180_s27] sm:$0x3]  ;;  %s175_s23 = sadd.s32 1, %s426_s23  }
  0x17   : >> { %p172_p5 = scmp.ge.s32.totalorder %s175_s23, 8  }
  0xd6   : >> { %v229_v8 = vpop.f32.mrf.mxu0 }
  0xd7   : >> { %v235_v9 = vadd.f32 %v229_v8, %v181_v7 }
  0xd8   : >> { %v378_v10 = vpop.f32.mrf.mxu0 }
  0xd9   : >> { %404 = vtanh.f32 %v235_v9  ;;  %v366_v15 = vmul.f32 -1.442695, %v235_v9 }
  0xda   : >> { %v232_v11 = vpop.f32.mrf.mxu0 }
  0xdb   : >> { %406 = vpow2.f32 %v366_v15 }
  0xdc   : >> { %v379_v12 = vpop.f32.mrf.mxu0 }
  0xe6   : >> { %v405_v13 = vpop.eup %404 }
  0xe7   : >> { %249 = vrot.lane.b32.xlu0 %v405_v13, %s431_s28 }
  0xe8   : >> { %v407_v16 = vpop.eup %406 }
  0xe9   : >> { %v239_v17 = vadd.f32 1.0, %v407_v16 }
  0xeb   : >> { %244 = vrot.lane.b32.xlu0 %v183_v14, %s432_s29  ;;  %408 = vrcp.f32 %v239_v17 }
  0xf8   : >> { %v409_v18 = vpop.eup %408 }
 0x159   : >> { %v250_v19 = vpop.permute.xlu0 %249 }
 0x15a   : >> { %v252_v20 = vmul.f32 %v409_v18, %v250_v19 }
 0x15c   : >> { %254 = vrot.lane.b32.xlu1 %v252_v20, %s432_s29 }
 0x15d   : >> { %v245_v21 = vpop.permute.xlu0 %244 }
 0x15e   : >> { %v247_v22 = vmul.f32 %v409_v18, %v245_v21 }
 0x1ce   : >> { %v255_v23 = vpop.permute.xlu1 %254 }
 0x1cf   : >> { %v257_v24 = vadd.f32 %v255_v23, %v247_v22 }
 0x1d1   : >> { %410 = vtanh.f32 %v257_v24 }
 0x1de   : >> { %v411_v25 = vpop.eup %410 }
 0x1df   : >> { %260 = vrot.lane.b32.xlu1 %v411_v25, %s433_s30 }
 0x1e3   : >> { %270 = vrot.lane.b32.xlu1 %v257_v24, %s434_s3 }
 0x251   : >> { %v261_v26 = vpop.permute.xlu1 %260 }
 0x252   : >> { %v263_v27 = vmul.f32 %v409_v18, %v261_v26 }
 0x254   : >> { %265 = vrot.lane.b32.xlu0 %v263_v27, %s435_s4 }
 0x255   : >> { %v271_v28 = vpop.permute.xlu1 %270 }
 0x256   : >> { %273 = vst.msk [vmem:[#allocation3] sm:$0x3] %vm165_vm0, %v271_v28 }
 0x2c3   : > { %174 = sbr.rel (!%p172_p5) target bundleno = 16 (0x10), region = 70 }
 0x2c6   : >> { %v266_v29 = vpop.permute.xlu0 %265 }
 0x2c7   : >> { %268 = vst.msk [vmem:[#allocation2] sm:$0x3] %vm165_vm0, %v266_v29  ;;  %275 = vst.msk [vmem:[%s274_s5] sm:$0x3] %vm165_vm0, %v266_v29 }
 0x2c8 PF: > { %s12_s9 = sadd.s32 1, %s422_s9  }
 0x2c9   : > { %p9_p6 = scmp.ge.s32.totalorder %s12_s9, 4  }
 0x2cb   :  { %11 = sbr.rel (!%p9_p6) target bundleno = 1 (0x1), region = 81 }

// kernel: _lambda_.22
= control target key start
LH: loop header
LB: loop body
LE: loop exit
PB: predicated region body
PF: predicated region fallthrough
CT: control target
= control target key end

     0   :  { %vm16_vm0 = vcmask 261120   ;;  %s124_s0 = inlined_call_operand.vmem [shape: f32[2,8,32], index: 0, kind: input, shape index: {}]   ;;  %s125_s1 = inlined_call_operand.vmem [shape: f32[1,1,32], index: 1, kind: input, shape index: {}]   ;;  %s126_s2 = inlined_call_operand.vmem [shape: f32[1,1,32], index: 2, kind: input, shape index: {}]   ;;  %s127_s3 = inlined_call_operand.vmem [shape: f32[2,8,32], index: 3, kind: output, shape index: {}]  }
   0x1   :  { %v14_v0 = vld [vmem:[%s124_s0] sm:$0xff]  ;;  %v15_v1 = vld [vmem:[%s124_s0 + $0x8] sm:$0xff] }
   0x2   :  { %v17_v2 = vsel %vm16_vm0, %v14_v0, 0.0  ;;  %v18_v3 = vsel %vm16_vm0, %v15_v1, 0.0  ;;  %v76_v28 = vld [vmem:[%s125_s1] ss:$0 sm:$0xff] }
   0x3   :  { %v19_v4 = vadd.f32 %v18_v3, %v17_v2  ;;  %v77_v31 = vld [vmem:[%s126_s2] ss:$0 sm:$0xff] }
   0x5   :  { %v20_v5 = vrot.slane %v19_v4, 4 }
   0x7   :  { %v21_v6 = vadd.f32 %v20_v5, %v19_v4 }
   0x9   :  { %v22_v7 = vrot.slane %v21_v6, 2 }
   0xb   :  { %v23_v8 = vadd.f32 %v22_v7, %v21_v6 }
   0xd   :  { %v24_v9 = vrot.slane %v23_v8, 1 }
   0xf   :  { %v25_v10 = vadd.f32 %v24_v9, %v23_v8 }
  0x11   :  { %v27_v11 = vmul.f32 0.0625, %v25_v10 }
  0x13   :  { %v28_v12 = vsub.f32 %v14_v0, %v27_v11  ;;  %v29_v13 = vsub.f32 %v15_v1, %v27_v11 }
  0x15   :  { %v30_v14 = vmul.f32 %v28_v12, %v28_v12  ;;  %v31_v15 = vmul.f32 %v29_v13, %v29_v13 }
  0x17   :  { %v32_v16 = vsel %vm16_vm0, %v30_v14, 0.0  ;;  %v33_v17 = vsel %vm16_vm0, %v31_v15, 0.0 }
  0x18   :  { %v34_v18 = vadd.f32 %v33_v17, %v32_v16 }
  0x1a   :  { %v35_v19 = vrot.slane %v34_v18, 4 }
  0x1c   :  { %v36_v20 = vadd.f32 %v35_v19, %v34_v18 }
  0x1e   :  { %v37_v21 = vrot.slane %v36_v20, 2 }
  0x20   :  { %v38_v22 = vadd.f32 %v37_v21, %v36_v20 }
  0x22   :  { %v39_v23 = vrot.slane %v38_v22, 1 }
  0x24   :  { %v40_v24 = vadd.f32 %v39_v23, %v38_v22 }
  0x26   :  { %v41_v25 = vmul.f32 0.0625, %v40_v24 }
  0x28   :  { %v42_v26 = vadd.f32 1e-05, %v41_v25 }
  0x2a   :  { %78 = vrsqrt.f32 %v42_v26 }
  0x37   :  { %v79_v27 = vpop.eup %78 }
  0x38   :  { %v44_v29 = vmul.f32 %v79_v27, %v28_v12  ;;  %v45_v30 = vmul.f32 %v79_v27, %v29_v13 }
  0x3a   :  { %v53_v32 = vmul.f32 %v76_v28, %v44_v29  ;;  %v54_v33 = vmul.f32 %v76_v28, %v45_v30 }
  0x3c   :  { %v62_v34 = vadd.f32 %v77_v31, %v53_v32  ;;  %v63_v35 = vadd.f32 %v77_v31, %v54_v33 }
  0x3e   :  { %vm64_vm1 = vcmp.ge.f32.partialorder %v62_v34, 0.0  ;;  %v66_v36 = vmul.f32 0.01, %v62_v34  ;;  %vm65_vm2 = vcmp.ge.f32.partialorder %v63_v35, 0.0  ;;  %v67_v37 = vmul.f32 0.01, %v63_v35 }
  0x40   :  { %v68_v38 = vsel %vm64_vm1, %v62_v34, %v66_v36  ;;  %v69_v39 = vsel %vm65_vm2, %v63_v35, %v67_v37 }
  0x41   :  { %70 = vst.msk [vmem:[%s127_s3] sm:$0xff] %vm16_vm0, %v68_v38  ;;  %71 = vst.msk [vmem:[%s127_s3 + $0x8] sm:$0xff] %vm16_vm0, %v69_v39 }

// kernel: _lambda_.18
= control target key start
LH: loop header
LB: loop body
LE: loop exit
PB: predicated region body
PF: predicated region fallthrough
CT: control target
= control target key end

     0   :  { %s381_s12 = smov 0   ;;  %s407_s0 = inlined_call_operand.vmem [shape: f32[16,16], index: 0, kind: input, shape index: {}]   ;;  %s408_s1 = inlined_call_operand.vmem [shape: bf16[2,16,64], index: 1, kind: input, shape index: {}]   ;;  %s409_s2 = inlined_call_operand.vmem [shape: f32[2,1,64], index: 2, kind: input, shape index: {}]   ;;  %s410_s3 = inlined_call_operand.vmem [shape: f32[2,16,64], index: 3, kind: output, shape index: {}]  }
   0x1 LB: > { %s316_s13 = sadd.s32 4294967295, %s357_s12   ;;  %p320_p0 = scmp.ge.s32.totalorder %s357_s12, 1  ;;  %s357_s12 = sphi %s381_s12, %s13_s12  }
   0x2   : > { %p145_p1 = scmp.lt.s32.totalorder %s357_s12, 3 }
   0x4   : > { %p146_p2 = pnand %p320_p0, %p145_p1 }
   0x5   : > { %p172_p3 = scmp.lt.s32.totalorder (!%p146_p2), %s316_s13, 1 }
   0x6   : > { %149 = sbr.rel (%p146_p2) target bundleno = 218 (0xda), region = 32 }
   0xb   : > { %v359_v0 = vmov 0.0   ;;  %vm360_vm0 = vmmov 0   ;;  %s412_s13 = smov (!%p172_p3, %s316_s13), 1  ;;  %v186_v1 = vld [vmem:[%s407_s0] sm:$0xff]  ;;  %v187_v2 = vld [vmem:[%s407_s0 + $0x8] sm:$0xff]  ;;  %vm204_vm1 = vcmask 130048  }
   0xc   : > { %334 = vmatprep.subr.bf16.mxu0 %v359_v0  ;;  %336 = vmatprep.mubr.msk.bf16.mxu0 %vm360_vm0, %v359_v0  ;;  %s330_s14 = sshll.u32 %s412_s13, 3  ;;  %v188_v4 = vpack.c.bf16 %v187_v2, %v186_v1  ;;  %s179_s24 = scalar_lea.vmem %s409_s2, %s412_s13  ;;  %vm249_vm2 = vcmask 523264  }
   0xd   : > { %s176_s21 = scalar_lea.vmem %s408_s1, %s330_s14  ;;  %s331_s25 = sshll.u32 %s412_s13, 4  ;;  %v325_v5 = vld [vmem:[%s179_s24] ss:$0 sm:$0xff] }
   0xe   : > { %v350_v3 = vld [vmem:[%s176_s21] sm:$0xff]   ;;  %s184_s28 = scalar_lea.vmem %s410_s3, %s331_s25 }
   0xf   : > { %335 = vmatpush3.bf16.msra.mxu0 %v350_v3 }
  0x12   : > { %337 = vmatmul.mubr.msk.bf16.vlgmr.msra.gmra.mxu0 %vm204_vm1, %v188_v4 }
  0xd2   : > { %v242_v6 = vpop.f32.mrf.mxu0 }
  0xd3   : > { %v243_v7 = vadd.f32 %v325_v5, %v242_v6 }
  0xd4   : > { %v338_v8 = vpop.f32.mrf.mxu0 }
  0xd5   : > { %250 = vst.msk [vmem:[%s184_s28] sm:$0xff] %vm249_vm2, %v243_v7 }
  0xd6   : > { %v245_v9 = vpop.f32.mrf.mxu0 }
  0xd7   : > { %v246_v10 = vadd.f32 %v325_v5, %v245_v9 }
  0xd8   : > { %v339_v11 = vpop.f32.mrf.mxu0 }
  0xd9   : > { %251 = vst.msk [vmem:[%s184_s28 + $0x8] sm:$0xff] %vm249_vm2, %v246_v10 }
  0xda PF: > { %s13_s12 = sadd.s32 1, %s357_s12  }
  0xdb   : > { %p10_p4 = scmp.ge.s32.totalorder %s13_s12, 4  }
  0xdd   :  { %12 = sbr.rel (!%p10_p4) target bundleno = 1 (0x1), region = 65 }

// kernel: _lambda_.20
= control target key start
LH: loop header
LB: loop body
LE: loop exit
PB: predicated region body
PF: predicated region fallthrough
CT: control target
= control target key end

     0   :  { %s394_s12 = smov 0   ;;  %s420_s0 = inlined_call_operand.vmem [shape: f32[16,32], index: 0, kind: input, shape index: {}]   ;;  %s421_s1 = inlined_call_operand.vmem [shape: bf16[2,32,64], index: 1, kind: input, shape index: {}]   ;;  %s422_s2 = inlined_call_operand.vmem [shape: f32[2,1,64], index: 2, kind: input, shape index: {}]   ;;  %s423_s3 = inlined_call_operand.vmem [shape: f32[2,16,64], index: 3, kind: output, shape index: {}]  }
   0x1 LB: > { %s324_s13 = sadd.s32 4294967295, %s370_s12   ;;  %p328_p0 = scmp.ge.s32.totalorder %s370_s12, 1  ;;  %s370_s12 = sphi %s394_s12, %s13_s12  }
   0x2   : > { %p145_p1 = scmp.lt.s32.totalorder %s370_s12, 3 }
   0x4   : > { %p146_p2 = pnand %p328_p0, %p145_p1 }
   0x5   : > { %p172_p3 = scmp.lt.s32.totalorder (!%p146_p2), %s324_s13, 1 }
   0x6   : > { %149 = sbr.rel (%p146_p2) target bundleno = 222 (0xde), region = 32 }
   0xb   : > { %v372_v0 = vmov 0.0   ;;  %vm373_vm0 = vmmov 0   ;;  %s425_s13 = smov (!%p172_p3, %s324_s13), 1  ;;  %v186_v3 = vld [vmem:[%s420_s0] sm:$0xff]  ;;  %v187_v4 = vld [vmem:[%s420_s0 + $0x8] sm:$0xff]  ;;  %vm212_vm1 = vcmask 261120  }
   0xc   : > { %344 = vmatprep.subr.bf16.mxu0 %v372_v0  ;;  %348 = vmatprep.mubr.msk.bf16.mxu0 %vm373_vm0, %v372_v0  ;;  %s339_s14 = sshll.u32 %s425_s13, 4  ;;  %v188_v5 = vpack.c.bf16 %v187_v4, %v186_v3  ;;  %s179_s24 = scalar_lea.vmem %s422_s2, %s425_s13  ;;  %vm257_vm2 = vcmask 523264  }
   0xd   : > { %s176_s17 = scalar_lea.vmem %s421_s1, %s339_s14  ;;  %v333_v6 = vld [vmem:[%s179_s24] ss:$0 sm:$0xff]  ;;  %s184_s27 = scalar_lea.vmem %s423_s3, %s339_s14 }
   0xe   : > { %v362_v1 = vld [vmem:[%s176_s17 + $0x8] sm:$0xff]   ;;  %v363_v2 = vld [vmem:[%s176_s17] sm:$0xff]  }
   0xf   : > { %345 = vmatpush3.bf16.msra.mxu0 %v362_v1 }
  0x10   : > { %346 = vmatprep.subr.bf16.mxu0 %v372_v0 }
  0x13   : > { %347 = vmatpush3.bf16.msra.mxu0 %v363_v2 }
  0x16   : > { %349 = vmatmul.mubr.msk.bf16.vlgmr.msra.gmra.mxu0 %vm212_vm1, %v188_v5 }
  0xd6   : > { %v250_v7 = vpop.f32.mrf.mxu0 }
  0xd7   : > { %v251_v8 = vadd.f32 %v333_v6, %v250_v7 }
  0xd8   : > { %v350_v9 = vpop.f32.mrf.mxu0 }
  0xd9   : > { %258 = vst.msk [vmem:[%s184_s27] sm:$0xff] %vm257_vm2, %v251_v8 }
  0xda   : > { %v253_v10 = vpop.f32.mrf.mxu0 }
  0xdb   : > { %v254_v11 = vadd.f32 %v333_v6, %v253_v10 }
  0xdc   : > { %v351_v12 = vpop.f32.mrf.mxu0 }
  0xdd   : > { %259 = vst.msk [vmem:[%s184_s27 + $0x8] sm:$0xff] %vm257_vm2, %v254_v11 }
  0xde PF: > { %s13_s12 = sadd.s32 1, %s370_s12  }
  0xdf   : > { %p10_p4 = scmp.ge.s32.totalorder %s13_s12, 4  }
  0xe1   :  { %12 = sbr.rel (!%p10_p4) target bundleno = 1 (0x1), region = 65 }

// kernel: _lambda_.23
= control target key start
LH: loop header
LB: loop body
LE: loop exit
PB: predicated region body
PF: predicated region fallthrough
CT: control target
= control target key end

     0   :  { %s393_s12 = smov 0   ;;  %s419_s0 = inlined_call_operand.vmem [shape: f32[16,32], index: 0, kind: input, shape index: {}]   ;;  %s420_s1 = inlined_call_operand.vmem [shape: bf16[2,32,32], index: 1, kind: input, shape index: {}]   ;;  %s421_s2 = inlined_call_operand.vmem [shape: f32[2,1,32], index: 2, kind: input, shape index: {}]   ;;  %s422_s3 = inlined_call_operand.vmem [shape: f32[2,16,32], index: 3, kind: output, shape index: {}]  }
   0x1 LB: > { %s323_s13 = sadd.s32 4294967295, %s369_s12   ;;  %p327_p0 = scmp.ge.s32.totalorder %s369_s12, 1  ;;  %s369_s12 = sphi %s393_s12, %s13_s12  }
   0x2   : > { %p145_p1 = scmp.lt.s32.totalorder %s369_s12, 3 }
   0x4   : > { %p146_p2 = pnand %p327_p0, %p145_p1 }
   0x5   : > { %p172_p3 = scmp.lt.s32.totalorder (!%p146_p2), %s323_s13, 1 }
   0x6   : > { %149 = sbr.rel (%p146_p2) target bundleno = 222 (0xde), region = 32 }
   0xb   : > { %v371_v0 = vmov 0.0   ;;  %vm372_vm0 = vmmov 0   ;;  %s424_s13 = smov (!%p172_p3, %s323_s13), 1  ;;  %v186_v3 = vld [vmem:[%s419_s0] sm:$0xff]  ;;  %v187_v4 = vld [vmem:[%s419_s0 + $0x8] sm:$0xff]  ;;  %vm212_vm1 = vcmask 261120  }
   0xc   : > { %343 = vmatprep.subr.bf16.mxu0 %v371_v0  ;;  %347 = vmatprep.mubr.msk.bf16.mxu0 %vm372_vm0, %v371_v0  ;;  %s338_s14 = sshll.u32 %s424_s13, 4  ;;  %v188_v5 = vpack.c.bf16 %v187_v4, %v186_v3  ;;  %s179_s24 = scalar_lea.vmem %s421_s2, %s424_s13 }
   0xd   : > { %s176_s17 = scalar_lea.vmem %s420_s1, %s338_s14  ;;  %v332_v6 = vld [vmem:[%s179_s24] ss:$0 sm:$0xff]  ;;  %s184_s27 = scalar_lea.vmem %s422_s3, %s338_s14 }
   0xe   : > { %v361_v1 = vld [vmem:[%s176_s17 + $0x8] sm:$0xff]   ;;  %v362_v2 = vld [vmem:[%s176_s17] sm:$0xff]  }
   0xf   : > { %344 = vmatpush3.bf16.msra.mxu0 %v361_v1 }
  0x10   : > { %345 = vmatprep.subr.bf16.mxu0 %v371_v0 }
  0x13   : > { %346 = vmatpush3.bf16.msra.mxu0 %v362_v2 }
  0x16   : > { %348 = vmatmul.mubr.msk.bf16.vlgmr.msra.gmra.mxu0 %vm212_vm1, %v188_v5 }
  0xd6   : > { %v250_v7 = vpop.f32.mrf.mxu0 }
  0xd7   : > { %v251_v8 = vadd.f32 %v332_v6, %v250_v7 }
  0xd8   : > { %v349_v9 = vpop.f32.mrf.mxu0 }
  0xd9   : > { %257 = vst.msk [vmem:[%s184_s27] sm:$0xff] %vm212_vm1, %v251_v8 }
  0xda   : > { %v253_v10 = vpop.f32.mrf.mxu0 }
  0xdb   : > { %v254_v11 = vadd.f32 %v332_v6, %v253_v10 }
  0xdc   : > { %v350_v12 = vpop.f32.mrf.mxu0 }
  0xdd   : > { %258 = vst.msk [vmem:[%s184_s27 + $0x8] sm:$0xff] %vm212_vm1, %v254_v11 }
  0xde PF: > { %s13_s12 = sadd.s32 1, %s369_s12  }
  0xdf   : > { %p10_p4 = scmp.ge.s32.totalorder %s13_s12, 4  }
  0xe1   :  { %12 = sbr.rel (!%p10_p4) target bundleno = 1 (0x1), region = 65 }

// kernel: _lambda_.25
= control target key start
LH: loop header
LB: loop body
LE: loop exit
PB: predicated region body
PF: predicated region fallthrough
CT: control target
= control target key end

     0   :  { %s381_s12 = smov 0   ;;  %s407_s0 = inlined_call_operand.vmem [shape: f32[16,16], index: 0, kind: input, shape index: {}]   ;;  %s408_s1 = inlined_call_operand.vmem [shape: bf16[2,16,32], index: 1, kind: input, shape index: {}]   ;;  %s409_s2 = inlined_call_operand.vmem [shape: f32[2,1,32], index: 2, kind: input, shape index: {}]   ;;  %s410_s3 = inlined_call_operand.vmem [shape: f32[2,16,32], index: 3, kind: output, shape index: {}]  }
   0x1 LB: > { %s316_s13 = sadd.s32 4294967295, %s357_s12   ;;  %p320_p0 = scmp.ge.s32.totalorder %s357_s12, 1  ;;  %s357_s12 = sphi %s381_s12, %s13_s12  }
   0x2   : > { %p145_p1 = scmp.lt.s32.totalorder %s357_s12, 3 }
   0x4   : > { %p146_p2 = pnand %p320_p0, %p145_p1 }
   0x5   : > { %p172_p3 = scmp.lt.s32.totalorder (!%p146_p2), %s316_s13, 1 }
   0x6   : > { %149 = sbr.rel (%p146_p2) target bundleno = 218 (0xda), region = 32 }
   0xb   : > { %v359_v0 = vmov 0.0   ;;  %vm360_vm0 = vmmov 0   ;;  %s412_s13 = smov (!%p172_p3, %s316_s13), 1  ;;  %v186_v1 = vld [vmem:[%s407_s0] sm:$0xff]  ;;  %v187_v2 = vld [vmem:[%s407_s0 + $0x8] sm:$0xff]  ;;  %vm204_vm1 = vcmask 130048  }
   0xc   : > { %334 = vmatprep.subr.bf16.mxu0 %v359_v0  ;;  %336 = vmatprep.mubr.msk.bf16.mxu0 %vm360_vm0, %v359_v0  ;;  %s330_s14 = sshll.u32 %s412_s13, 3  ;;  %v188_v4 = vpack.c.bf16 %v187_v2, %v186_v1  ;;  %s179_s24 = scalar_lea.vmem %s409_s2, %s412_s13  ;;  %vm249_vm2 = vcmask 261120  }
   0xd   : > { %s176_s21 = scalar_lea.vmem %s408_s1, %s330_s14  ;;  %s331_s25 = sshll.u32 %s412_s13, 4  ;;  %v325_v5 = vld [vmem:[%s179_s24] ss:$0 sm:$0xff] }
   0xe   : > { %v350_v3 = vld [vmem:[%s176_s21] sm:$0xff]   ;;  %s184_s28 = scalar_lea.vmem %s410_s3, %s331_s25 }
   0xf   : > { %335 = vmatpush3.bf16.msra.mxu0 %v350_v3 }
  0x12   : > { %337 = vmatmul.mubr.msk.bf16.vlgmr.msra.gmra.mxu0 %vm204_vm1, %v188_v4 }
  0xd2   : > { %v242_v6 = vpop.f32.mrf.mxu0 }
  0xd3   : > { %v243_v7 = vadd.f32 %v325_v5, %v242_v6 }
  0xd4   : > { %v338_v8 = vpop.f32.mrf.mxu0 }
  0xd5   : > { %250 = vst.msk [vmem:[%s184_s28] sm:$0xff] %vm249_vm2, %v243_v7 }
  0xd6   : > { %v245_v9 = vpop.f32.mrf.mxu0 }
  0xd7   : > { %v246_v10 = vadd.f32 %v325_v5, %v245_v9 }
  0xd8   : > { %v339_v11 = vpop.f32.mrf.mxu0 }
  0xd9   : > { %251 = vst.msk [vmem:[%s184_s28 + $0x8] sm:$0xff] %vm249_vm2, %v246_v10 }
  0xda PF: > { %s13_s12 = sadd.s32 1, %s357_s12  }
  0xdb   : > { %p10_p4 = scmp.ge.s32.totalorder %s13_s12, 4  }
  0xdd   :  { %12 = sbr.rel (!%p10_p4) target bundleno = 1 (0x1), region = 65 }

// kernel: _lambda_.24
= control target key start
LH: loop header
LB: loop body
LE: loop exit
PB: predicated region body
PF: predicated region fallthrough
CT: control target
= control target key end

     0   :  { %s442_s9 = smov 0   ;;  %s498_s0 = inlined_call_operand.vmem [shape: f32[2,8,2,32], index: 0, kind: input, shape index: {}]   ;;  %s499_s1 = inlined_call_operand.vmem [shape: bf16[2,8,32], index: 1, kind: input, shape index: {}]   ;;  %s500_s2 = inlined_call_operand.vmem [shape: f32[2,8,2,8], index: 2, kind: output, shape index: {}]  }
   0x1 LB: > { %s448_s10 = sadd.s32 4294967295, %s413_s9   ;;  %p350_p0 = scmp.ge.s32.totalorder %s413_s9, 1  ;;  %s413_s9 = sphi %s442_s9, %s12_s9  }
   0x2   : > { %p121_p1 = scmp.lt.s32.totalorder %s413_s9, 3 }
   0x4   : > { %p122_p2 = pnand %p350_p0, %p121_p1 }
   0x5   : > { %p147_p3 = scmp.lt.s32.totalorder (!%p122_p2), %s448_s10, 1  ;;  %s471_s23 = smov (!%p122_p2), 0  }
   0x6   : > { %125 = sbr.rel (%p122_p2) target bundleno = 712 (0x2c8), region = 28 }
   0xb   : > { %vm162_vm0 = vcmask 58368   ;;  %v419_v0 = vmov 0.0   ;;  %s148_s11 = scalar_select %p147_p3, %s448_s10, 1 }
   0xc   : > { %163 = vst.msk [vmem:[#allocation2] sm:$0x3] %vm162_vm0, %v419_v0  ;;  %164 = vst.msk [vmem:[#allocation3] sm:$0x3] %vm162_vm0, %v419_v0 }
   0xd   : > { %s361_s12 = sshll.u32 %s148_s11, 4  ;;  %s353_s13 = sshll.u32 %s148_s11, 2 }
   0xe   : > { %s459_s16 = scalar_lea.vmem %s498_s0, %s361_s12  ;;  %s155_s19 = scalar_lea.vmem %s499_s1, %s353_s13 }
   0xf   : > { %s467_s22 = scalar_lea.vmem %s500_s2, %s361_s12  ;;  %v469_v1 = vld [vmem:[%s155_s19] sm:$0xf] }
  0x10 LB: >> { %vm185_vm1 = vcmask 1043456   ;;  %v420_v3 = vmov 0.0   ;;  %vm421_vm2 = vmmov 0   ;;  %vm181_vm3 = vcmask 64512   ;;  %p172_p4 = scmp.eq.s32.totalorder %s448_s10, 0  ;;  %s173_s24 = ssub.s32 7, %s417_s23  ;;  %s417_s23 = sphi %s471_s23, %s171_s23  }
  0x11   : >> { %365 = vmatprep.subr.bf16.mxu0 %v420_v3  ;;  %v187_v4 = vsel %vm185_vm1, %v469_v1, 0  ;;  %367 = vmatprep.mubr.msk.bf16.mxu0 %vm421_vm2, %v420_v3  ;;  %s422_s28 = smov 112   ;;  %s423_s29 = smov 8  }
  0x12   : >> { %366 = vmatpush3.bf16.msra.mxu0 %v187_v4  ;;  %s480_s25 = scalar_select %p172_p4, %s417_s23, %s173_s24 }
  0x13   : >> { %v178_v2 = vld [vmem:[#allocation2] sm:$0x3]  ;;  %v179_v13 = vld [vmem:[#allocation3] sm:$0x3]  ;;  %s424_s30 = smov 16   ;;  %s425_s3 = smov 120  }
  0x14   : >> { %v180_v5 = vpack.c.bf16 %v178_v2, %v178_v2  ;;  %s356_s26 = sshll.u32 %s480_s25, 1  ;;  %s426_s4 = smov 104  }
  0x15   : >> { %s176_s27 = scalar_lea.vmem %s459_s16, %s356_s26  ;;  %s268_s5 = scalar_lea.vmem %s467_s22, %s356_s26 }
  0x16   : >> { %368 = vmatmul.mubr.msk.bf16.vlgmr.msra.gmra.mxu0 %vm181_vm3, %v180_v5  ;;  %v177_v6 = vld [vmem:[%s176_s27] sm:$0x3]  ;;  %s171_s23 = sadd.s32 1, %s417_s23  }
  0x17   : >> { %p168_p5 = scmp.ge.s32.totalorder %s171_s23, 8  }
  0xd6   : >> { %v223_v7 = vpop.f32.mrf.mxu0 }
  0xd7   : >> { %v229_v8 = vadd.f32 %v223_v7, %v177_v6 }
  0xd8   : >> { %v369_v9 = vpop.f32.mrf.mxu0 }
  0xd9   : >> { %395 = vtanh.f32 %v229_v8  ;;  %v358_v14 = vmul.f32 -1.442695, %v229_v8 }
  0xda   : >> { %v226_v10 = vpop.f32.mrf.mxu0 }
  0xdb   : >> { %397 = vpow2.f32 %v358_v14 }
  0xdc   : >> { %v370_v11 = vpop.f32.mrf.mxu0 }
  0xe6   : >> { %v396_v12 = vpop.eup %395 }
  0xe7   : >> { %243 = vrot.lane.b32.xlu0 %v396_v12, %s422_s28 }
  0xe8   : >> { %v398_v15 = vpop.eup %397 }
  0xe9   : >> { %v233_v16 = vadd.f32 1.0, %v398_v15 }
  0xeb   : >> { %238 = vrot.lane.b32.xlu0 %v179_v13, %s423_s29  ;;  %399 = vrcp.f32 %v233_v16 }
  0xf8   : >> { %v400_v17 = vpop.eup %399 }
 0x159   : >> { %v244_v18 = vpop.permute.xlu0 %243 }
 0x15a   : >> { %v246_v19 = vmul.f32 %v400_v17, %v244_v18 }
 0x15c   : >> { %248 = vrot.lane.b32.xlu1 %v246_v19, %s423_s29 }
 0x15d   : >> { %v239_v20 = vpop.permute.xlu0 %238 }
 0x15e   : >> { %v241_v21 = vmul.f32 %v400_v17, %v239_v20 }
 0x1ce   : >> { %v249_v22 = vpop.permute.xlu1 %248 }
 0x1cf   : >> { %v251_v23 = vadd.f32 %v249_v22, %v241_v21 }
 0x1d1   : >> { %401 = vtanh.f32 %v251_v23 }
 0x1de   : >> { %v402_v24 = vpop.eup %401 }
 0x1df   : >> { %254 = vrot.lane.b32.xlu1 %v402_v24, %s424_s30 }
 0x1e3   : >> { %264 = vrot.lane.b32.xlu1 %v251_v23, %s425_s3 }
 0x251   : >> { %v255_v25 = vpop.permute.xlu1 %254 }
 0x252   : >> { %v257_v26 = vmul.f32 %v400_v17, %v255_v25 }
 0x254   : >> { %259 = vrot.lane.b32.xlu0 %v257_v26, %s426_s4 }
 0x255   : >> { %v265_v27 = vpop.permute.xlu1 %264 }
 0x256   : >> { %267 = vst.msk [vmem:[#allocation3] sm:$0x3] %vm162_vm0, %v265_v27 }
 0x2c3   : > { %170 = sbr.rel (!%p168_p5) target bundleno = 16 (0x10), region = 70 }
 0x2c6   : >> { %v260_v28 = vpop.permute.xlu0 %259 }
 0x2c7   : >> { %262 = vst.msk [vmem:[#allocation2] sm:$0x3] %vm162_vm0, %v260_v28  ;;  %269 = vst.msk [vmem:[%s268_s5] sm:$0x3] %vm162_vm0, %v260_v28 }
 0x2c8 PF: > { %s12_s9 = sadd.s32 1, %s413_s9  }
 0x2c9   : > { %p9_p6 = scmp.ge.s32.totalorder %s12_s9, 4  }
 0x2cb   :  { %11 = sbr.rel (!%p9_p6) target bundleno = 1 (0x1), region = 81 }

// kernel: _lambda_.27
= control target key start
LH: loop header
LB: loop body
LE: loop exit
PB: predicated region body
PF: predicated region fallthrough
CT: control target
= control target key end

     0   :  { %vm16_vm0 = vcmask 130048   ;;  %s124_s0 = inlined_call_operand.vmem [shape: f32[2,8,16], index: 0, kind: input, shape index: {}]   ;;  %s125_s1 = inlined_call_operand.vmem [shape: f32[1,1,16], index: 1, kind: input, shape index: {}]   ;;  %s126_s2 = inlined_call_operand.vmem [shape: f32[1,1,16], index: 2, kind: input, shape index: {}]   ;;  %s127_s3 = inlined_call_operand.vmem [shape: f32[2,8,16], index: 3, kind: output, shape index: {}]  }
   0x1   :  { %v14_v0 = vld [vmem:[%s124_s0] sm:$0xff]  ;;  %v15_v1 = vld [vmem:[%s124_s0 + $0x8] sm:$0xff] }
   0x2   :  { %v17_v2 = vsel %vm16_vm0, %v14_v0, 0.0  ;;  %v18_v3 = vsel %vm16_vm0, %v15_v1, 0.0  ;;  %v76_v28 = vld [vmem:[%s125_s1] ss:$0 sm:$0xff] }
   0x3   :  { %v19_v4 = vadd.f32 %v18_v3, %v17_v2  ;;  %v77_v31 = vld [vmem:[%s126_s2] ss:$0 sm:$0xff] }
   0x5   :  { %v20_v5 = vrot.slane %v19_v4, 4 }
   0x7   :  { %v21_v6 = vadd.f32 %v20_v5, %v19_v4 }
   0x9   :  { %v22_v7 = vrot.slane %v21_v6, 2 }
   0xb   :  { %v23_v8 = vadd.f32 %v22_v7, %v21_v6 }
   0xd   :  { %v24_v9 = vrot.slane %v23_v8, 1 }
   0xf   :  { %v25_v10 = vadd.f32 %v24_v9, %v23_v8 }
  0x11   :  { %v27_v11 = vmul.f32 0.0625, %v25_v10 }
  0x13   :  { %v28_v12 = vsub.f32 %v14_v0, %v27_v11  ;;  %v29_v13 = vsub.f32 %v15_v1, %v27_v11 }
  0x15   :  { %v30_v14 = vmul.f32 %v28_v12, %v28_v12  ;;  %v31_v15 = vmul.f32 %v29_v13, %v29_v13 }
  0x17   :  { %v32_v16 = vsel %vm16_vm0, %v30_v14, 0.0  ;;  %v33_v17 = vsel %vm16_vm0, %v31_v15, 0.0 }
  0x18   :  { %v34_v18 = vadd.f32 %v33_v17, %v32_v16 }
  0x1a   :  { %v35_v19 = vrot.slane %v34_v18, 4 }
  0x1c   :  { %v36_v20 = vadd.f32 %v35_v19, %v34_v18 }
  0x1e   :  { %v37_v21 = vrot.slane %v36_v20, 2 }
  0x20   :  { %v38_v22 = vadd.f32 %v37_v21, %v36_v20 }
  0x22   :  { %v39_v23 = vrot.slane %v38_v22, 1 }
  0x24   :  { %v40_v24 = vadd.f32 %v39_v23, %v38_v22 }
  0x26   :  { %v41_v25 = vmul.f32 0.0625, %v40_v24 }
  0x28   :  { %v42_v26 = vadd.f32 1e-05, %v41_v25 }
  0x2a   :  { %78 = vrsqrt.f32 %v42_v26 }
  0x37   :  { %v79_v27 = vpop.eup %78 }
  0x38   :  { %v44_v29 = vmul.f32 %v79_v27, %v28_v12  ;;  %v45_v30 = vmul.f32 %v79_v27, %v29_v13 }
  0x3a   :  { %v53_v32 = vmul.f32 %v76_v28, %v44_v29  ;;  %v54_v33 = vmul.f32 %v76_v28, %v45_v30 }
  0x3c   :  { %v62_v34 = vadd.f32 %v77_v31, %v53_v32  ;;  %v63_v35 = vadd.f32 %v77_v31, %v54_v33 }
  0x3e   :  { %vm64_vm1 = vcmp.ge.f32.partialorder %v62_v34, 0.0  ;;  %v66_v36 = vmul.f32 0.01, %v62_v34  ;;  %vm65_vm2 = vcmp.ge.f32.partialorder %v63_v35, 0.0  ;;  %v67_v37 = vmul.f32 0.01, %v63_v35 }
  0x40   :  { %v68_v38 = vsel %vm64_vm1, %v62_v34, %v66_v36  ;;  %v69_v39 = vsel %vm65_vm2, %v63_v35, %v67_v37 }
  0x41   :  { %70 = vst.msk [vmem:[%s127_s3] sm:$0xff] %vm16_vm0, %v68_v38  ;;  %71 = vst.msk [vmem:[%s127_s3 + $0x8] sm:$0xff] %vm16_vm0, %v69_v39 }

// kernel: _lambda_.29
= control target key start
LH: loop header
LB: loop body
LE: loop exit
PB: predicated region body
PF: predicated region fallthrough
CT: control target
= control target key end

     0   :  { %vm23_vm0 = vcmask 64512   ;;  %v113_v0 = vmov 0.0   ;;  %vm114_vm1 = vmmov 0   ;;  %s147_s1 = inlined_call_operand.vmem [shape: f32[8,128], index: 1, kind: input, shape index: {}]   ;;  %s148_s0 = inlined_call_operand.vmem [shape: f32[2,8], index: 0, kind: input, shape index: {}]   ;;  %s149_s2 = inlined_call_operand.vmem [shape: f32[1,128], index: 2, kind: input, shape index: {}]   ;;  %s150_s3 = inlined_call_operand.vmem [shape: f32[2,128], index: 3, kind: output, shape index: {}]  }
   0x1   :  { %106 = vmatprep.subr.mxu0 %v113_v0  ;;  %v15_v1 = vld [vmem:[%s147_s1] sm:$0xff]  ;;  %108 = vmatprep.mubr.msk.f32.mxu0 %vm114_vm1, %v113_v0 }
   0x2   :  { %v14_v2 = vld [vmem:[%s148_s0] sm:$0x3]  ;;  %107 = vmatpush3.msra.mxu0 %v15_v1 }
   0x3   :  { %109 = vmatmul.mubr.msk.f32.vlgmr.msra.gmra.mxu0 %vm23_vm0, %v14_v2  ;;  %v102_v3 = vld [vmem:[%s149_s2] ss:$0 sm:$0xff] }
  0xc3   :  { %v93_v4 = vpop.f32.mrf.mxu0 }
  0xc4   :  { %v94_v5 = vadd.f32 %v102_v3, %v93_v4 }
  0xc5   :  { %v110_v6 = vpop.f32.mrf.mxu0 }
  0xc6   :  { %97 = vst [vmem:[%s150_s3] sm:$0x3] %v94_v5 }

// kernel: _lambda_.35
= control target key start
LH: loop header
LB: loop body
LE: loop exit
PB: predicated region body
PF: predicated region fallthrough
CT: control target
= control target key end

     0   :  { %vm17_vm0 = vcmask 130048   ;;  %s162_s0 = inlined_call_operand.vmem [shape: f32[2,8,16], index: 0, kind: input, shape index: {}]   ;;  %s163_s1 = inlined_call_operand.vmem [shape: f32[1,1,16], index: 1, kind: input, shape index: {}]   ;;  %s164_s2 = inlined_call_operand.vmem [shape: f32[1,1,16], index: 2, kind: input, shape index: {}]   ;;  %s165_s3 = inlined_call_operand.hbm [shape: f32[2,8,16], index: 3, kind: output, shape index: {}]  }
   0x1   :  { %v15_v0 = vld [vmem:[%s162_s0] sm:$0xff]  ;;  %v16_v1 = vld [vmem:[%s162_s0 + $0x8] sm:$0xff] }
   0x2   :  { %v18_v2 = vsel %vm17_vm0, %v15_v0, 0.0  ;;  %v19_v3 = vsel %vm17_vm0, %v16_v1, 0.0 }
   0x3   :  { %8 = vsyncpa [#allocation3], 0  ;;  %v20_v4 = vadd.f32 %v19_v3, %v18_v2  ;;  %v89_v28 = vld [vmem:[%s163_s1] ss:$0 sm:$0xff]  ;;  %s118_s19 = smov [#allocation2]  }
   0x4   :  { %v90_v31 = vld [vmem:[%s164_s2] ss:$0 sm:$0xff]  ;;  %s78_s20 = sshll.u32 %s118_s19, 4  ;;  %s79_s20 = int_to_ptr.vmem [resolvable:$true] %s78_s20 }
   0x5   :  { %v21_v5 = vrot.slane %v20_v4, 4  ;;  %s96_s1 = scalar_lea.vmem %s79_s20, 256  ;;  %p101_p1 = scmp.lt.s32.totalorder %s79_s20, %s79_s20 }
   0x6   :  { %p97_p0 = scmp.ne.s32.totalorder %s79_s20, %s96_s1  ;;  %p102_p2 = scmp.lt.s32.totalorder %s96_s1, %s96_s1 }
   0x7   :  { %v22_v6 = vadd.f32 %v21_v5, %v20_v4 }
   0x8   :  { %p103_p3 = por %p102_p2, %p101_p1 }
   0x9   :  { %v23_v7 = vrot.slane %v22_v6, 2 }
   0xa   :  { %p104_p4 = pnand %p103_p3, %p97_p0 }
   0xb   :  { %v24_v8 = vadd.f32 %v23_v7, %v22_v6 }
   0xd   :  { %v25_v9 = vrot.slane %v24_v8, 1 }
   0xf   :  { %v26_v10 = vadd.f32 %v25_v9, %v24_v8 }
  0x11   :  { %v28_v11 = vmul.f32 0.0625, %v26_v10 }
  0x13   :  { %v29_v12 = vsub.f32 %v15_v0, %v28_v11  ;;  %v30_v13 = vsub.f32 %v16_v1, %v28_v11 }
  0x15   :  { %v31_v14 = vmul.f32 %v29_v12, %v29_v12  ;;  %v32_v15 = vmul.f32 %v30_v13, %v30_v13 }
  0x17   :  { %v33_v16 = vsel %vm17_vm0, %v31_v14, 0.0  ;;  %v34_v17 = vsel %vm17_vm0, %v32_v15, 0.0 }
  0x18   :  { %v35_v18 = vadd.f32 %v34_v17, %v33_v16 }
  0x1a   :  { %v36_v19 = vrot.slane %v35_v18, 4 }
  0x1c   :  { %v37_v20 = vadd.f32 %v36_v19, %v35_v18 }
  0x1e   :  { %v38_v21 = vrot.slane %v37_v20, 2 }
  0x20   :  { %v39_v22 = vadd.f32 %v38_v21, %v37_v20 }
  0x22   :  { %v40_v23 = vrot.slane %v39_v22, 1 }
  0x24   :  { %v41_v24 = vadd.f32 %v40_v23, %v39_v22 }
  0x26   :  { %v42_v25 = vmul.f32 0.0625, %v41_v24 }
  0x28   :  { %v43_v26 = vadd.f32 1e-05, %v42_v25 }
  0x2a   :  { %94 = vrsqrt.f32 %v43_v26 }
  0x37   :  { %v95_v27 = vpop.eup %94 }
  0x38   :  { %v45_v29 = vmul.f32 %v95_v27, %v29_v12  ;;  %v46_v30 = vmul.f32 %v95_v27, %v30_v13 }
  0x3a   :  { %v54_v32 = vmul.f32 %v89_v28, %v45_v29  ;;  %v55_v33 = vmul.f32 %v89_v28, %v46_v30 }
  0x3c   :  { %v63_v34 = vadd.f32 %v90_v31, %v54_v32  ;;  %v64_v35 = vadd.f32 %v90_v31, %v55_v33 }
  0x3e   :  { %vm65_vm1 = vcmp.ge.f32.partialorder %v63_v34, 0.0  ;;  %v67_v36 = vmul.f32 0.01, %v63_v34  ;;  %vm66_vm2 = vcmp.ge.f32.partialorder %v64_v35, 0.0  ;;  %v68_v37 = vmul.f32 0.01, %v64_v35 }
  0x40   :  { %v69_v38 = vsel %vm65_vm1, %v63_v34, %v67_v36  ;;  %v70_v39 = vsel %vm66_vm2, %v64_v35, %v68_v37 }
  0x41   :  { %71 = vst.msk [vmem:[#allocation2] sm:$0xff] %vm17_vm0, %v69_v38  ;;  %72 = vst.msk [vmem:[#allocation2 + $0x8] sm:$0xff] %vm17_vm0, %v70_v39 }
  0x42   :  { %107 = shalt.err (!%p104_p4)
}
  0x43   :  { %s119_s2 = smov 128   ;;  %s120_s21 = smov 8  }
  0x44   :  { %84 = dma.vmem_to_hbm [thread:$0]  %s79_s20, 256, %s165_s3, [#allocation3], %s119_s2, %s119_s2, %s120_s21  }
  0x45   :  { %116 = dma.done.wait [#allocation3], 256  }
  0x46   :  { %117 = vsyncadd [#allocation3], 4294967040 }
  0x47   :  { %88 = vsyncpa [#allocation3], 1 }

// kernel: _lambda_.28
= control target key start
LH: loop header
LB: loop body
LE: loop exit
PB: predicated region body
PF: predicated region fallthrough
CT: control target
= control target key end

     0   :  { %14 = vsyncpa [#allocation3], 0  ;;  %v413_v1 = vmov 0.0   ;;  %vm414_vm0 = vmmov 0   ;;  %s616_s0 = inlined_call_operand.vmem [shape: f32[2,128], index: 0, kind: input, shape index: {}]   ;;  %s617_s1 = inlined_call_operand.vmem [shape: f32[128,8], index: 1, kind: input, shape index: {}]   ;;  %s618_s2 = inlined_call_operand.vmem [shape: f32[1,8], index: 2, kind: input, shape index: {}]   ;;  %s619_s3 = inlined_call_operand.vmem [shape: f32[128,8], index: 3, kind: input, shape index: {}]   ;;  %s620_s4 = inlined_call_operand.vmem [shape: f32[1,8], index: 4, kind: input, shape index: {}]   ;;  %s621_s5 = inlined_call_operand.vmem [shape: f32[2,8], index: 5, kind: input, shape index: {}]   ;;  %s622_s6 = inlined_call_operand.hbm [shape: f32[2,8], index: 6, kind: output, shape index: {0}]   ;;  %s623_s7 = inlined_call_operand.hbm [shape: f32[2,8], index: 7, kind: output, shape index: {1}]   ;;  %s624_s8 = inlined_call_operand.vmem [shape: f32[2,8], index: 8, kind: output, shape index: {2}]  }
   0x1   :  { %v137_v0 = vld [vmem:[%s619_s3 + $0x78] sm:$0xff]  ;;  %328 = vmatprep.subr.mxu1 %v413_v1  ;;  %v136_v2 = vld [vmem:[%s619_s3 + $0x70] sm:$0xff]  ;;  %293 = vmatprep.subr.mxu0 %v413_v1  ;;  %v135_v3 = vld [vmem:[%s619_s3 + $0x68] sm:$0xff] }
   0x2   :  { %329 = vmatpush3.msra.mxu1 %v137_v0  ;;  %360 = vmatprep.mubr.msk.f32.mxu1 %vm414_vm0, %v413_v1  ;;  %v44_v4 = vld [vmem:[%s617_s1 + $0x78] sm:$0xff]  ;;  %v43_v5 = vld [vmem:[%s617_s1 + $0x70] sm:$0xff]  ;;  %v134_v6 = vld [vmem:[%s619_s3 + $0x60] sm:$0xff] }
   0x3   :  { %330 = vmatprep.subr.mxu1 %v413_v1  ;;  %325 = vmatprep.mubr.msk.f32.mxu0 %vm414_vm0, %v413_v1  ;;  %v42_v7 = vld [vmem:[%s617_s1 + $0x68] sm:$0xff]  ;;  %v133_v8 = vld [vmem:[%s619_s3 + $0x58] sm:$0xff]  ;;  %v41_v9 = vld [vmem:[%s617_s1 + $0x60] sm:$0xff] }
   0x4   :  { %331 = vmatpush3.msra.mxu1 %v136_v2  ;;  %294 = vmatpush3.msra.mxu0 %v44_v4  ;;  %v132_v10 = vld [vmem:[%s619_s3 + $0x50] sm:$0xff]  ;;  %v40_v11 = vld [vmem:[%s617_s1 + $0x58] sm:$0xff]  ;;  %v131_v12 = vld [vmem:[%s619_s3 + $0x48] sm:$0xff] }
   0x5   :  { %332 = vmatprep.subr.mxu1 %v413_v1  ;;  %295 = vmatprep.subr.mxu0 %v413_v1  ;;  %v39_v13 = vld [vmem:[%s617_s1 + $0x50] sm:$0xff] }
   0x6   :  { %333 = vmatpush3.msra.mxu1 %v135_v3  ;;  %296 = vmatpush3.msra.mxu0 %v43_v5 }
   0x7   :  { %334 = vmatprep.subr.mxu1 %v413_v1  ;;  %297 = vmatprep.subr.mxu0 %v413_v1 }
   0x8   :  { %335 = vmatpush3.msra.mxu1 %v134_v6  ;;  %298 = vmatpush3.msra.mxu0 %v42_v7 }
   0x9   :  { %336 = vmatprep.subr.mxu1 %v413_v1  ;;  %299 = vmatprep.subr.mxu0 %v413_v1 }
   0xa   :  { %337 = vmatpush3.msra.mxu1 %v133_v8  ;;  %300 = vmatpush3.msra.mxu0 %v41_v9 }
   0xb   :  { %338 = vmatprep.subr.mxu1 %v413_v1  ;;  %301 = vmatprep.subr.mxu0 %v413_v1 }
   0xc   :  { %15 = vsyncpa [#allocation5], 0  ;;  %339 = vmatpush3.msra.mxu1 %v132_v10  ;;  %302 = vmatpush3.msra.mxu0 %v40_v11  ;;  %v130_v14 = vld [vmem:[%s619_s3 + $0x40] sm:$0xff]  ;;  %v38_v15 = vld [vmem:[%s617_s1 + $0x48] sm:$0xff]  ;;  %vm215_vm1 = vcmask 58368  }
   0xd   :  { %340 = vmatprep.subr.mxu1 %v413_v1  ;;  %303 = vmatprep.subr.mxu0 %v413_v1  ;;  %v129_v16 = vld [vmem:[%s619_s3 + $0x38] sm:$0xff]  ;;  %v37_v17 = vld [vmem:[%s617_s1 + $0x40] sm:$0xff]  ;;  %v128_v18 = vld [vmem:[%s619_s3 + $0x30] sm:$0xff] }
   0xe   :  { %341 = vmatpush3.msra.mxu1 %v131_v12  ;;  %304 = vmatpush3.msra.mxu0 %v39_v13  ;;  %v36_v19 = vld [vmem:[%s617_s1 + $0x38] sm:$0xff]  ;;  %v127_v20 = vld [vmem:[%s619_s3 + $0x28] sm:$0xff]  ;;  %v35_v21 = vld [vmem:[%s617_s1 + $0x30] sm:$0xff] }
   0xf   :  { %342 = vmatprep.subr.mxu1 %v413_v1  ;;  %305 = vmatprep.subr.mxu0 %v413_v1  ;;  %v126_v22 = vld [vmem:[%s619_s3 + $0x20] sm:$0xff]  ;;  %v34_v23 = vld [vmem:[%s617_s1 + $0x28] sm:$0xff]  ;;  %v125_v24 = vld [vmem:[%s619_s3 + $0x18] sm:$0xff] }
  0x10   :  { %343 = vmatpush3.msra.mxu1 %v130_v14  ;;  %306 = vmatpush3.msra.mxu0 %v38_v15  ;;  %v33_v25 = vld [vmem:[%s617_s1 + $0x20] sm:$0xff]  ;;  %v124_v26 = vld [vmem:[%s619_s3 + $0x10] sm:$0xff]  ;;  %v32_v27 = vld [vmem:[%s617_s1 + $0x18] sm:$0xff] }
  0x11   :  { %344 = vmatprep.subr.mxu1 %v413_v1  ;;  %307 = vmatprep.subr.mxu0 %v413_v1  ;;  %v123_v28 = vld [vmem:[%s619_s3 + $0x8] sm:$0xff]  ;;  %v31_v29 = vld [vmem:[%s617_s1 + $0x10] sm:$0xff]  ;;  %v122_v30 = vld [vmem:[%s619_s3] sm:$0xff] }
  0x12   :  { %345 = vmatpush3.msra.mxu1 %v129_v16  ;;  %308 = vmatpush3.msra.mxu0 %v37_v17  ;;  %v30_v31 = vld [vmem:[%s617_s1 + $0x8] sm:$0xff]  ;;  %v28_v32 = vld [vmem:[%s616_s0] sm:$0x3]  ;;  %s415_s0 = smov [#allocation4]  }
  0x13   :  { %346 = vmatprep.subr.mxu1 %v413_v1  ;;  %309 = vmatprep.subr.mxu0 %v413_v1  ;;  %v29_v33 = vld [vmem:[%s617_s1] sm:$0xff]  ;;  %s241_s28 = sshll.u32 %s415_s0, 4  ;;  %s416_s1 = smov [#allocation2]   ;;  %s242_s28 = int_to_ptr.vmem [resolvable:$true] %s241_s28 }
  0x14   :  { %347 = vmatpush3.msra.mxu1 %v128_v18  ;;  %310 = vmatpush3.msra.mxu0 %v36_v19  ;;  %v258_v34 = vld [vmem:[%s620_s4] ss:$0 sm:$0xff]  ;;  %s231_s9 = sshll.u32 %s416_s1, 4  ;;  %s369_s4 = scalar_lea.vmem %s242_s28, 32  ;;  %s232_s9 = int_to_ptr.vmem [resolvable:$true] %s231_s9 }
  0x15   :  { %348 = vmatprep.subr.mxu1 %v413_v1  ;;  %311 = vmatprep.subr.mxu0 %v413_v1  ;;  %v257_v36 = vld [vmem:[%s618_s2] ss:$0 sm:$0xff]  ;;  %p370_p0 = scmp.ne.s32.totalorder %s242_s28, %s369_s4  ;;  %p374_p1 = scmp.lt.s32.totalorder %s242_s28, %s242_s28 }
  0x16   :  { %349 = vmatpush3.msra.mxu1 %v127_v20  ;;  %312 = vmatpush3.msra.mxu0 %v35_v21  ;;  %p375_p2 = scmp.lt.s32.totalorder %s369_s4, %s369_s4 }
  0x17   :  { %350 = vmatprep.subr.mxu1 %v413_v1  ;;  %313 = vmatprep.subr.mxu0 %v413_v1 }
  0x18   :  { %351 = vmatpush3.msra.mxu1 %v126_v22  ;;  %314 = vmatpush3.msra.mxu0 %v34_v23  ;;  %p376_p3 = por %p375_p2, %p374_p1 }
  0x19   :  { %352 = vmatprep.subr.mxu1 %v413_v1  ;;  %315 = vmatprep.subr.mxu0 %v413_v1 }
  0x1a   :  { %353 = vmatpush3.msra.mxu1 %v125_v24  ;;  %316 = vmatpush3.msra.mxu0 %v33_v25  ;;  %p377_p4 = pnand %p376_p3, %p370_p0 }
  0x1b   :  { %354 = vmatprep.subr.mxu1 %v413_v1  ;;  %317 = vmatprep.subr.mxu0 %v413_v1 }
  0x1c   :  { %355 = vmatpush3.msra.mxu1 %v124_v26  ;;  %318 = vmatpush3.msra.mxu0 %v32_v27 }
  0x1d   :  { %356 = vmatprep.subr.mxu1 %v413_v1  ;;  %319 = vmatprep.subr.mxu0 %v413_v1 }
  0x1e   :  { %357 = vmatpush3.msra.mxu1 %v123_v28  ;;  %320 = vmatpush3.msra.mxu0 %v31_v29 }
  0x1f   :  { %358 = vmatprep.subr.mxu1 %v413_v1  ;;  %321 = vmatprep.subr.mxu0 %v413_v1 }
  0x20   :  { %359 = vmatpush3.msra.mxu1 %v122_v30  ;;  %322 = vmatpush3.msra.mxu0 %v30_v31 }
  0x21   :  { %361 = vmatmul.mubr.f32.vlgmr.msra.gmra.mxu1 %v28_v32  ;;  %323 = vmatprep.subr.mxu0 %v413_v1 }
  0x22   :  { %324 = vmatpush3.msra.mxu0 %v29_v33 }
  0x23   :  { %326 = vmatmul.mubr.f32.vlgmr.msra.gmra.mxu0 %v28_v32 }
  0xe1   :  { %v211_v35 = vpop.f32.mrf.mxu1 }
  0xe2   :  { %v212_v37 = vadd.f32 %v258_v34, %v211_v35 }
  0xe3   :  { %v362_v38 = vpop.f32.mrf.mxu1  ;;  %v118_v39 = vpop.f32.mrf.mxu0 }
  0xe4   :  { %v219_v40 = vmul.f32 0.5, %v212_v37  ;;  %v119_v41 = vadd.f32 %v257_v36, %v118_v39  ;;  %217 = vst.msk [vmem:[#allocation4] sm:$0x3] %vm215_vm1, %v212_v37 }
  0xe5   :  { %v327_v42 = vpop.f32.mrf.mxu0 }
  0xe6   :  { %380 = shalt.err (!%p377_p4)
}
  0xe7   :  { %244 = dma.vmem_to_hbm [thread:$0]  %s242_s28, 32, %s623_s7, [#allocation5]   ;;  %v220_v43 = vmul.f32 1.442695, %v219_v40  ;;  %216 = vst.msk [vmem:[#allocation2] sm:$0x3] %vm215_vm1, %v119_v41 }
  0xe8   :  { %s389_s11 = scalar_lea.vmem %s232_s9, 32  ;;  %p394_p6 = scmp.lt.s32.totalorder %s232_s9, %s232_s9 }
  0xe9   :  { %p390_p5 = scmp.ne.s32.totalorder %s232_s9, %s389_s11  ;;  %p395_p7 = scmp.lt.s32.totalorder %s389_s11, %s389_s11 }
  0xeb   :  { %p396_p8 = por %p395_p7, %p394_p6 }
  0xed   :  { %p397_p9 = pnand %p396_p8, %p390_p5 }
  0xef   :  { %400 = shalt.err (!%p397_p9)
}
  0xf0   :  { %234 = dma.vmem_to_hbm [thread:$0]  %s232_s9, 32, %s622_s6, [#allocation3]   ;;  %367 = vpow2.f32 %v220_v43  ;;  %v218_v44 = vld [vmem:[%s621_s5] sm:$0x3] }
  0xfd   :  { %v368_v45 = vpop.eup %367 }
  0xfe   :  { %v222_v46 = vmul.f32 %v368_v45, %v218_v44 }
 0x100   :  { %v223_v47 = vadd.f32 %v222_v46, %v119_v41 }
 0x102   :  { %224 = vst.msk [vmem:[%s624_s8] sm:$0x3] %vm215_vm1, %v223_v47 }
 0x103   :  { %409 = dma.done.wait [#allocation3], 32  }
 0x104   :  { %410 = vsyncadd [#allocation3], 4294967264 }
 0x105   :  { %411 = dma.done.wait [#allocation5], 32  }
 0x106   :  { %412 = vsyncadd [#allocation5], 4294967264 }
 0x107   :  { %255 = vsyncpa [#allocation3], 1 }
 0x108   :  { %256 = vsyncpa [#allocation5], 1 }

</bundles_post_ra>
